<compile_context>
chip_gen: v6e
topology: v6e:2x2x1
jax: 0.10.0
libtpu: 0.0.40
codegen_flags: <defaults>
</compile_context>

<pallas_src>
import functools

import jax
import jax.numpy as jnp
import numpy as np
from jax.experimental import pallas as pl

_K = 5      # conv kernel size
_PAD = 2    # conv padding
_CONV_DEFS = (
    # (c_in, hw_in, c_out, hw_out, stride)
    (3, 32, 12, 16, 2),
    (12, 16, 12, 8, 2),
    (12, 8, 12, 8, 1),
)


# ----------------------------- Pallas kernel --------------------------------

def _lenet_kernel(a0_ref,
                  s1_ref, b1_ref, c1_ref,
                  s2_ref, b2_ref, c2_ref,
                  s3_ref, b3_ref, c3_ref,
                  e_ref, cl_ref,
                  out_ref, *, n):
    """Fused LeNet forward.  All operands are 2-D; everything stays in VMEM."""
    neg_slope = jnp.float32(0.01)   # nn.LeakyReLU() default

    def conv_layer(a, s_ref, b_ref, bias_ref, c_in, w_in, h_out):
        # a: (H_in*n, C_in*W_in)  ->  (H_out*n, C_out*W_out)
        # Row-unfold (H taps + zero pad) via one matmul with constant S.
        p = jnp.dot(s_ref[...], a, preferred_element_type=jnp.float32)
        rows = h_out * n
        kcols = c_in * w_in
        acc = None
        # Per kernel-row i: contract (channel, kernel-col) with structured B_i.
        for i in range(_K):
            term = jnp.dot(p[i * rows:(i + 1) * rows, :],
                           b_ref[i * kcols:(i + 1) * kcols, :],
                           preferred_element_type=jnp.float32)
            acc = term if acc is None else acc + term
        z = acc + bias_ref[...]                     # (1, C_out*W_out) broadcast
        return jnp.maximum(z, neg_slope * z)        # LeakyReLU (slope < 1)

    a = a0_ref[...]                                          # (32*n,  96)
    a = conv_layer(a, s1_ref, b1_ref, c1_ref, 3, 32, 16)     # (16*n, 192)
    a = conv_layer(a, s2_ref, b2_ref, c2_ref, 12, 16, 8)     # ( 8*n,  96)
    a = conv_layer(a, s3_ref, b3_ref, c3_ref, 12, 8, 8)      # ( 8*n,  96)

    # Linear(768 -> 10); PyTorch flatten order is folded into e_ref.
    out = jnp.zeros((n, 10), jnp.float32)
    for h in range(8):
        out = out + jnp.dot(a[h * n:(h + 1) * n, :],
                            e_ref[h * 96:(h + 1) * 96, :],
                            preferred_element_type=jnp.float32)
    out_ref[...] = out + cl_ref[...]


# ----------------------- one-time parameter preparation ---------------------

def _row_select(h_in, h_out, stride, n):
    """S[(i*h_out+ho)*n + b, h*n + b] = 1 where h = stride*ho + i - PAD (if in range)."""
    s = np.zeros((_K * h_out * n, h_in * n), np.float32)
    for i in range(_K):
        for ho in range(h_out):
            h = stride * ho + i - _PAD
            if 0 <= h < h_in:
                for b in range(n):
                    s[(i * h_out + ho) * n + b, h * n + b] = 1.0
    return jnp.asarray(s)


def _col_unfold(w_in, w_out, stride):
    """V[j, w, wo] = 1 iff w == stride*wo + j - PAD."""
    v = np.zeros((_K, w_in, w_out), np.float32)
    for j in range(_K):
        for wo in range(w_out):
            w = stride * wo + j - _PAD
            if 0 <= w < w_in:
                v[j, w, wo] = 1.0
    return v


def prepare_constants(params, n):
    """Rearrange PyTorch-layout parameters into the fused kernel's operands (run once)."""
    consts = {}
    conv_params = (("1", params["w1"], params["b1"]),
                   ("2", params["w2"], params["b2"]),
                   ("3", params["w3"], params["b3"]))
    for (name, w, b), (c_in, hw_in, c_out, hw_out, stride) in zip(conv_params, _CONV_DEFS):
        consts["s" + name] = _row_select(hw_in, hw_out, stride, n)
        v = jnp.asarray(_col_unfold(hw_in, hw_out, stride))          # (5, W_in, W_out)
        blocks = []
        for i in range(_K):
            wi = w[:, :, i, :]                                       # (C_out, C_in, 5)
            bi = jnp.einsum("ocj,jab->caob", wi, v)                  # (C_in, W_in, C_out, W_out)
            blocks.append(bi.reshape(c_in * hw_in, c_out * hw_out))
        consts["b" + name] = jnp.concatenate(blocks, axis=0)         # (5*C_in*W_in, C_out*W_out)
        consts["c" + name] = jnp.repeat(b, hw_out)[None, :]          # (1, C_out*W_out)
    # Linear weight, rearranged so rows follow the kernel's (h, c, w) layout
    # while matching torch.flatten's C-major (c*64 + h*8 + w) feature order.
    wl = params["wl"].reshape(10, 12, 8, 8)                          # (k, c, h, w)
    consts["e"] = jnp.transpose(wl, (2, 1, 3, 0)).reshape(12 * 8 * 8, 10)
    consts["cl"] = params["bl"][None, :]                             # (1, 10)
    return consts


# ------------------------------ forward wrapper ------------------------------

def _forward_impl(consts, x):
    n = x.shape[0]
    # (N, 3, 32, 32) NCHW -> rows (h, n), cols (c, w).  The only layout op in
    # the whole forward pass, applied once to the HBM input (24 KiB).
    a0 = jnp.transpose(x, (2, 0, 1, 3)).reshape(32 * n, 3 * 32)
    args = (a0,
            consts["s1"], consts["b1"], consts["c1"],
            consts["s2"], consts["b2"], consts["c2"],
            consts["s3"], consts["b3"], consts["c3"],
            consts["e"], consts["cl"])
    return pl.pallas_call(
        functools.partial(_lenet_kernel, n=n),
        out_shape=jax.ShapeDtypeStruct((n, 10), jnp.float32),
        in_specs=[pl.BlockSpec(a.shape, lambda: (0, 0)) for a in args],
        out_specs=pl.BlockSpec((n, 10), lambda: (0, 0)),
    )(*args)


_forward_jit = jax.jit(_forward_impl)


def lenet_forward(consts, x):
    """Returns (logits, x_shape_list) matching the PyTorch module's forward."""
    n = x.shape[0]
    logits = _forward_jit(consts, x)
    x_shapes = [(n, 12, 16, 16), (n, 12, 8, 8), (n, 12, 8, 8), (n, 10)]
    return logits, x_shapes


# ----------------------------- params & reference ----------------------------

def init_params(key):
    keys = jax.random.split(key, 8)

    def u(k, shape, fan_in):
        bound = 1.0 / float(np.sqrt(fan_in))
        return jax.random.uniform(k, shape, jnp.float32, -bound, bound)

    return dict(
        w1=u(keys[0], (12, 3, 5, 5), 3 * 25), b1=u(keys[1], (12,), 3 * 25),
        w2=u(keys[2], (12, 12, 5, 5), 12 * 25), b2=u(keys[3], (12,), 12 * 25),
        w3=u(keys[4], (12, 12, 5, 5), 12 * 25), b3=u(keys[5], (12,), 12 * 25),
        wl=u(keys[6], (10, 768), 768), bl=u(keys[7], (10,), 768),
    )


def _reference_forward(params, x):
    """Plain-XLA reference (for a numerical self-check only)."""
    def conv(v, w, b, stride):
        y = jax.lax.conv_general_dilated(
            v, w, window_strides=(stride, stride),
            padding=((_PAD, _PAD), (_PAD, _PAD)),
            dimension_numbers=("NCHW", "OIHW", "NCHW"))
        return y + b[None, :, None, None]

    def lrelu(v):
        return jnp.where(v >= 0, v, 0.01 * v)

    a = lrelu(conv(x, params["w1"], params["b1"], 2))
    a = lrelu(conv(a, params["w2"], params["b2"], 2))
    a = lrelu(conv(a, params["w3"], params["b3"], 1))
    flat = a.reshape(a.shape[0], -1)
    return flat @ params["wl"].T + params["bl"]


# ---------------------------------- main -------------------------------------

if __name__ == "__main__":
    key = jax.random.PRNGKey(0)
    k_param, k_input = jax.random.split(key)
    params = init_params(k_param)

    # Input size implied by the module: Linear in_features = 768 = 12*8*8
    # -> 32x32x3 CIFAR input.  Batch of 2.
    x = jax.random.normal(k_input, (2, 3, 32, 32), jnp.float32)

    consts = prepare_constants(params, n=x.shape[0])
    logits, x_shapes = lenet_forward(consts, x)
    logits = jax.block_until_ready(logits)

    assert logits.shape == (2, 10)
    assert x_shapes == [(2, 12, 16, 16), (2, 12, 8, 8), (2, 12, 8, 8), (2, 10)]
    assert bool(jnp.all(jnp.isfinite(logits)))

    # Numerical self-check vs plain XLA (loose tolerance absorbs MXU f32
    # matmul rounding differences).
    ref = _reference_forward(params, x)
    scale = float(jnp.max(jnp.abs(ref))) + 1e-6
    err = float(jnp.max(jnp.abs(logits - ref)))
    assert err <= 0.05 * scale + 1e-4, f"mismatch vs reference: err={err}, scale={scale}"

    print("KERNEL_OK")
</pallas_src>

<mosaic_0001>
module attributes {stable_mosaic.version = 11 : i64} {
  func.func @_lenet_kernel(%arg0: memref<64x96xf32, #tpu.memory_space<vmem>>, %arg1: memref<160x64xf32, #tpu.memory_space<vmem>>, %arg2: memref<480x192xf32, #tpu.memory_space<vmem>>, %arg3: memref<1x192xf32, #tpu.memory_space<vmem>>, %arg4: memref<80x32xf32, #tpu.memory_space<vmem>>, %arg5: memref<960x96xf32, #tpu.memory_space<vmem>>, %arg6: memref<1x96xf32, #tpu.memory_space<vmem>>, %arg7: memref<80x16xf32, #tpu.memory_space<vmem>>, %arg8: memref<480x96xf32, #tpu.memory_space<vmem>>, %arg9: memref<1x96xf32, #tpu.memory_space<vmem>>, %arg10: memref<768x10xf32, #tpu.memory_space<vmem>>, %arg11: memref<1x10xf32, #tpu.memory_space<vmem>>, %arg12: memref<2x10xf32, #tpu.memory_space<vmem>>) attributes {dimension_semantics = [], scalar_prefetch = 0 : i64, scratch_operands = 0 : i64, tpu.core_type = #tpu.core_type<tc>} {
    %c0 = arith.constant 0 : index
    %c0_0 = arith.constant 0 : index
    %0 = vector.load %arg0[%c0, %c0_0] : memref<64x96xf32, #tpu.memory_space<vmem>>, vector<64x96xf32>
    %c0_1 = arith.constant 0 : index
    %c0_2 = arith.constant 0 : index
    %1 = vector.load %arg1[%c0_1, %c0_2] : memref<160x64xf32, #tpu.memory_space<vmem>>, vector<160x64xf32>
    %cst = arith.constant dense<0.000000e+00> : vector<160x96xf32>
    %2 = tpu.matmul %1, %0, %cst {dimension_numbers = #tpu.dot_dimension_numbers<[1], [0], [0], [1], [0, 0, 1, 1], [], []>} : vector<160x64xf32>, vector<64x96xf32>, vector<160x96xf32> -> vector<160x96xf32>
    %3 = vector.extract_strided_slice %2 {offsets = [0, 0], sizes = [32, 96], strides = [1, 1]} : vector<160x96xf32> to vector<32x96xf32>
    %c0_3 = arith.constant 0 : index
    %c0_4 = arith.constant 0 : index
    %4 = vector.load %arg2[%c0_3, %c0_4] : memref<480x192xf32, #tpu.memory_space<vmem>>, vector<96x192xf32>
    %cst_5 = arith.constant dense<0.000000e+00> : vector<32x192xf32>
    %5 = tpu.matmul %3, %4, %cst_5 {dimension_numbers = #tpu.dot_dimension_numbers<[1], [0], [0], [1], [0, 0, 1, 1], [], []>} : vector<32x96xf32>, vector<96x192xf32>, vector<32x192xf32> -> vector<32x192xf32>
    %6 = vector.extract_strided_slice %2 {offsets = [32, 0], sizes = [32, 96], strides = [1, 1]} : vector<160x96xf32> to vector<32x96xf32>
    %c96 = arith.constant 96 : index
    %c0_6 = arith.constant 0 : index
    %7 = vector.load %arg2[%c96, %c0_6] : memref<480x192xf32, #tpu.memory_space<vmem>>, vector<96x192xf32>
    %cst_7 = arith.constant dense<0.000000e+00> : vector<32x192xf32>
    %8 = tpu.matmul %6, %7, %cst_7 {dimension_numbers = #tpu.dot_dimension_numbers<[1], [0], [0], [1], [0, 0, 1, 1], [], []>} : vector<32x96xf32>, vector<96x192xf32>, vector<32x192xf32> -> vector<32x192xf32>
    %9 = arith.addf %5, %8 : vector<32x192xf32>
    %10 = vector.extract_strided_slice %2 {offsets = [64, 0], sizes = [32, 96], strides = [1, 1]} : vector<160x96xf32> to vector<32x96xf32>
    %c192 = arith.constant 192 : index
    %c0_8 = arith.constant 0 : index
    %11 = vector.load %arg2[%c192, %c0_8] : memref<480x192xf32, #tpu.memory_space<vmem>>, vector<96x192xf32>
    %cst_9 = arith.constant dense<0.000000e+00> : vector<32x192xf32>
    %12 = tpu.matmul %10, %11, %cst_9 {dimension_numbers = #tpu.dot_dimension_numbers<[1], [0], [0], [1], [0, 0, 1, 1], [], []>} : vector<32x96xf32>, vector<96x192xf32>, vector<32x192xf32> -> vector<32x192xf32>
    %13 = arith.addf %9, %12 : vector<32x192xf32>
    %14 = vector.extract_strided_slice %2 {offsets = [96, 0], sizes = [32, 96], strides = [1, 1]} : vector<160x96xf32> to vector<32x96xf32>
    %c288 = arith.constant 288 : index
    %c0_10 = arith.constant 0 : index
    %15 = vector.load %arg2[%c288, %c0_10] : memref<480x192xf32, #tpu.memory_space<vmem>>, vector<96x192xf32>
    %cst_11 = arith.constant dense<0.000000e+00> : vector<32x192xf32>
    %16 = tpu.matmul %14, %15, %cst_11 {dimension_numbers = #tpu.dot_dimension_numbers<[1], [0], [0], [1], [0, 0, 1, 1], [], []>} : vector<32x96xf32>, vector<96x192xf32>, vector<32x192xf32> -> vector<32x192xf32>
    %17 = arith.addf %13, %16 : vector<32x192xf32>
    %18 = vector.extract_strided_slice %2 {offsets = [128, 0], sizes = [32, 96], strides = [1, 1]} : vector<160x96xf32> to vector<32x96xf32>
    %c384 = arith.constant 384 : index
    %c0_12 = arith.constant 0 : index
    %19 = vector.load %arg2[%c384, %c0_12] : memref<480x192xf32, #tpu.memory_space<vmem>>, vector<96x192xf32>
    %cst_13 = arith.constant dense<0.000000e+00> : vector<32x192xf32>
    %20 = tpu.matmul %18, %19, %cst_13 {dimension_numbers = #tpu.dot_dimension_numbers<[1], [0], [0], [1], [0, 0, 1, 1], [], []>} : vector<32x96xf32>, vector<96x192xf32>, vector<32x192xf32> -> vector<32x192xf32>
    %21 = arith.addf %17, %20 : vector<32x192xf32>
    %c0_14 = arith.constant 0 : index
    %c0_15 = arith.constant 0 : index
    %22 = vector.load %arg3[%c0_14, %c0_15] : memref<1x192xf32, #tpu.memory_space<vmem>>, vector<1x192xf32>
    %23 = vector.broadcast %22 : vector<1x192xf32> to vector<32x192xf32>
    %24 = arith.addf %21, %23 : vector<32x192xf32>
    %cst_16 = arith.constant 0.00999999977 : f32
    %25 = vector.broadcast %cst_16 : f32 to vector<32x192xf32>
    %26 = arith.mulf %25, %24 : vector<32x192xf32>
    %27 = arith.maximumf %24, %26 : vector<32x192xf32>
    %c0_17 = arith.constant 0 : index
    %c0_18 = arith.constant 0 : index
    %28 = vector.load %arg4[%c0_17, %c0_18] : memref<80x32xf32, #tpu.memory_space<vmem>>, vector<80x32xf32>
    %cst_19 = arith.constant dense<0.000000e+00> : vector<80x192xf32>
    %29 = tpu.matmul %28, %27, %cst_19 {dimension_numbers = #tpu.dot_dimension_numbers<[1], [0], [0], [1], [0, 0, 1, 1], [], []>} : vector<80x32xf32>, vector<32x192xf32>, vector<80x192xf32> -> vector<80x192xf32>
    %30 = vector.extract_strided_slice %29 {offsets = [0, 0], sizes = [16, 192], strides = [1, 1]} : vector<80x192xf32> to vector<16x192xf32>
    %c0_20 = arith.constant 0 : index
    %c0_21 = arith.constant 0 : index
    %31 = vector.load %arg5[%c0_20, %c0_21] : memref<960x96xf32, #tpu.memory_space<vmem>>, vector<192x96xf32>
    %cst_22 = arith.constant dense<0.000000e+00> : vector<16x96xf32>
    %32 = tpu.matmul %30, %31, %cst_22 {dimension_numbers = #tpu.dot_dimension_numbers<[1], [0], [0], [1], [0, 0, 1, 1], [], []>} : vector<16x192xf32>, vector<192x96xf32>, vector<16x96xf32> -> vector<16x96xf32>
    %33 = vector.extract_strided_slice %29 {offsets = [16, 0], sizes = [16, 192], strides = [1, 1]} : vector<80x192xf32> to vector<16x192xf32>
    %c192_23 = arith.constant 192 : index
    %c0_24 = arith.constant 0 : index
    %34 = vector.load %arg5[%c192_23, %c0_24] : memref<960x96xf32, #tpu.memory_space<vmem>>, vector<192x96xf32>
    %cst_25 = arith.constant dense<0.000000e+00> : vector<16x96xf32>
    %35 = tpu.matmul %33, %34, %cst_25 {dimension_numbers = #tpu.dot_dimension_numbers<[1], [0], [0], [1], [0, 0, 1, 1], [], []>} : vector<16x192xf32>, vector<192x96xf32>, vector<16x96xf32> -> vector<16x96xf32>
    %36 = arith.addf %32, %35 : vector<16x96xf32>
    %37 = vector.extract_strided_slice %29 {offsets = [32, 0], sizes = [16, 192], strides = [1, 1]} : vector<80x192xf32> to vector<16x192xf32>
    %c384_26 = arith.constant 384 : index
    %c0_27 = arith.constant 0 : index
    %38 = vector.load %arg5[%c384_26, %c0_27] : memref<960x96xf32, #tpu.memory_space<vmem>>, vector<192x96xf32>
    %cst_28 = arith.constant dense<0.000000e+00> : vector<16x96xf32>
    %39 = tpu.matmul %37, %38, %cst_28 {dimension_numbers = #tpu.dot_dimension_numbers<[1], [0], [0], [1], [0, 0, 1, 1], [], []>} : vector<16x192xf32>, vector<192x96xf32>, vector<16x96xf32> -> vector<16x96xf32>
    %40 = arith.addf %36, %39 : vector<16x96xf32>
    %41 = vector.extract_strided_slice %29 {offsets = [48, 0], sizes = [16, 192], strides = [1, 1]} : vector<80x192xf32> to vector<16x192xf32>
    %c576 = arith.constant 576 : index
    %c0_29 = arith.constant 0 : index
    %42 = vector.load %arg5[%c576, %c0_29] : memref<960x96xf32, #tpu.memory_space<vmem>>, vector<192x96xf32>
    %cst_30 = arith.constant dense<0.000000e+00> : vector<16x96xf32>
    %43 = tpu.matmul %41, %42, %cst_30 {dimension_numbers = #tpu.dot_dimension_numbers<[1], [0], [0], [1], [0, 0, 1, 1], [], []>} : vector<16x192xf32>, vector<192x96xf32>, vector<16x96xf32> -> vector<16x96xf32>
    %44 = arith.addf %40, %43 : vector<16x96xf32>
    %45 = vector.extract_strided_slice %29 {offsets = [64, 0], sizes = [16, 192], strides = [1, 1]} : vector<80x192xf32> to vector<16x192xf32>
    %c768 = arith.constant 768 : index
    %c0_31 = arith.constant 0 : index
    %46 = vector.load %arg5[%c768, %c0_31] : memref<960x96xf32, #tpu.memory_space<vmem>>, vector<192x96xf32>
    %cst_32 = arith.constant dense<0.000000e+00> : vector<16x96xf32>
    %47 = tpu.matmul %45, %46, %cst_32 {dimension_numbers = #tpu.dot_dimension_numbers<[1], [0], [0], [1], [0, 0, 1, 1], [], []>} : vector<16x192xf32>, vector<192x96xf32>, vector<16x96xf32> -> vector<16x96xf32>
    %48 = arith.addf %44, %47 : vector<16x96xf32>
    %c0_33 = arith.constant 0 : index
    %c0_34 = arith.constant 0 : index
    %49 = vector.load %arg6[%c0_33, %c0_34] : memref<1x96xf32, #tpu.memory_space<vmem>>, vector<1x96xf32>
    %50 = vector.broadcast %49 : vector<1x96xf32> to vector<16x96xf32>
    %51 = arith.addf %48, %50 : vector<16x96xf32>
    %cst_35 = arith.constant 0.00999999977 : f32
    %52 = vector.broadcast %cst_35 : f32 to vector<16x96xf32>
    %53 = arith.mulf %52, %51 : vector<16x96xf32>
    %54 = arith.maximumf %51, %53 : vector<16x96xf32>
    %c0_36 = arith.constant 0 : index
    %c0_37 = arith.constant 0 : index
    %55 = vector.load %arg7[%c0_36, %c0_37] : memref<80x16xf32, #tpu.memory_space<vmem>>, vector<80x16xf32>
    %cst_38 = arith.constant dense<0.000000e+00> : vector<80x96xf32>
    %56 = tpu.matmul %55, %54, %cst_38 {dimension_numbers = #tpu.dot_dimension_numbers<[1], [0], [0], [1], [0, 0, 1, 1], [], []>} : vector<80x16xf32>, vector<16x96xf32>, vector<80x96xf32> -> vector<80x96xf32>
    %57 = vector.extract_strided_slice %56 {offsets = [0, 0], sizes = [16, 96], strides = [1, 1]} : vector<80x96xf32> to vector<16x96xf32>
    %c0_39 = arith.constant 0 : index
    %c0_40 = arith.constant 0 : index
    %58 = vector.load %arg8[%c0_39, %c0_40] : memref<480x96xf32, #tpu.memory_space<vmem>>, vector<96x96xf32>
    %cst_41 = arith.constant dense<0.000000e+00> : vector<16x96xf32>
    %59 = tpu.matmul %57, %58, %cst_41 {dimension_numbers = #tpu.dot_dimension_numbers<[1], [0], [0], [1], [0, 0, 1, 1], [], []>} : vector<16x96xf32>, vector<96x96xf32>, vector<16x96xf32> -> vector<16x96xf32>
    %60 = vector.extract_strided_slice %56 {offsets = [16, 0], sizes = [16, 96], strides = [1, 1]} : vector<80x96xf32> to vector<16x96xf32>
    %c96_42 = arith.constant 96 : index
    %c0_43 = arith.constant 0 : index
    %61 = vector.load %arg8[%c96_42, %c0_43] : memref<480x96xf32, #tpu.memory_space<vmem>>, vector<96x96xf32>
    %cst_44 = arith.constant dense<0.000000e+00> : vector<16x96xf32>
    %62 = tpu.matmul %60, %61, %cst_44 {dimension_numbers = #tpu.dot_dimension_numbers<[1], [0], [0], [1], [0, 0, 1, 1], [], []>} : vector<16x96xf32>, vector<96x96xf32>, vector<16x96xf32> -> vector<16x96xf32>
    %63 = arith.addf %59, %62 : vector<16x96xf32>
    %64 = vector.extract_strided_slice %56 {offsets = [32, 0], sizes = [16, 96], strides = [1, 1]} : vector<80x96xf32> to vector<16x96xf32>
    %c192_45 = arith.constant 192 : index
    %c0_46 = arith.constant 0 : index
    %65 = vector.load %arg8[%c192_45, %c0_46] : memref<480x96xf32, #tpu.memory_space<vmem>>, vector<96x96xf32>
    %cst_47 = arith.constant dense<0.000000e+00> : vector<16x96xf32>
    %66 = tpu.matmul %64, %65, %cst_47 {dimension_numbers = #tpu.dot_dimension_numbers<[1], [0], [0], [1], [0, 0, 1, 1], [], []>} : vector<16x96xf32>, vector<96x96xf32>, vector<16x96xf32> -> vector<16x96xf32>
    %67 = arith.addf %63, %66 : vector<16x96xf32>
    %68 = vector.extract_strided_slice %56 {offsets = [48, 0], sizes = [16, 96], strides = [1, 1]} : vector<80x96xf32> to vector<16x96xf32>
    %c288_48 = arith.constant 288 : index
    %c0_49 = arith.constant 0 : index
    %69 = vector.load %arg8[%c288_48, %c0_49] : memref<480x96xf32, #tpu.memory_space<vmem>>, vector<96x96xf32>
    %cst_50 = arith.constant dense<0.000000e+00> : vector<16x96xf32>
    %70 = tpu.matmul %68, %69, %cst_50 {dimension_numbers = #tpu.dot_dimension_numbers<[1], [0], [0], [1], [0, 0, 1, 1], [], []>} : vector<16x96xf32>, vector<96x96xf32>, vector<16x96xf32> -> vector<16x96xf32>
    %71 = arith.addf %67, %70 : vector<16x96xf32>
    %72 = vector.extract_strided_slice %56 {offsets = [64, 0], sizes = [16, 96], strides = [1, 1]} : vector<80x96xf32> to vector<16x96xf32>
    %c384_51 = arith.constant 384 : index
    %c0_52 = arith.constant 0 : index
    %73 = vector.load %arg8[%c384_51, %c0_52] : memref<480x96xf32, #tpu.memory_space<vmem>>, vector<96x96xf32>
    %cst_53 = arith.constant dense<0.000000e+00> : vector<16x96xf32>
    %74 = tpu.matmul %72, %73, %cst_53 {dimension_numbers = #tpu.dot_dimension_numbers<[1], [0], [0], [1], [0, 0, 1, 1], [], []>} : vector<16x96xf32>, vector<96x96xf32>, vector<16x96xf32> -> vector<16x96xf32>
    %75 = arith.addf %71, %74 : vector<16x96xf32>
    %c0_54 = arith.constant 0 : index
    %c0_55 = arith.constant 0 : index
    %76 = vector.load %arg9[%c0_54, %c0_55] : memref<1x96xf32, #tpu.memory_space<vmem>>, vector<1x96xf32>
    %77 = vector.broadcast %76 : vector<1x96xf32> to vector<16x96xf32>
    %78 = arith.addf %75, %77 : vector<16x96xf32>
    %cst_56 = arith.constant 0.00999999977 : f32
    %79 = vector.broadcast %cst_56 : f32 to vector<16x96xf32>
    %80 = arith.mulf %79, %78 : vector<16x96xf32>
    %81 = arith.maximumf %78, %80 : vector<16x96xf32>
    %cst_57 = arith.constant 0.000000e+00 : f32
    %82 = vector.broadcast %cst_57 : f32 to vector<2x10xf32>
    %83 = vector.extract_strided_slice %81 {offsets = [0, 0], sizes = [2, 96], strides = [1, 1]} : vector<16x96xf32> to vector<2x96xf32>
    %c0_58 = arith.constant 0 : index
    %c0_59 = arith.constant 0 : index
    %84 = vector.load %arg10[%c0_58, %c0_59] : memref<768x10xf32, #tpu.memory_space<vmem>>, vector<96x10xf32>
    %cst_60 = arith.constant dense<0.000000e+00> : vector<2x10xf32>
    %85 = tpu.matmul %83, %84, %cst_60 {dimension_numbers = #tpu.dot_dimension_numbers<[1], [0], [0], [1], [0, 0, 1, 1], [], []>} : vector<2x96xf32>, vector<96x10xf32>, vector<2x10xf32> -> vector<2x10xf32>
    %86 = arith.addf %82, %85 : vector<2x10xf32>
    %87 = vector.extract_strided_slice %81 {offsets = [2, 0], sizes = [2, 96], strides = [1, 1]} : vector<16x96xf32> to vector<2x96xf32>
    %c96_61 = arith.constant 96 : index
    %c0_62 = arith.constant 0 : index
    %88 = vector.load %arg10[%c96_61, %c0_62] : memref<768x10xf32, #tpu.memory_space<vmem>>, vector<96x10xf32>
    %cst_63 = arith.constant dense<0.000000e+00> : vector<2x10xf32>
    %89 = tpu.matmul %87, %88, %cst_63 {dimension_numbers = #tpu.dot_dimension_numbers<[1], [0], [0], [1], [0, 0, 1, 1], [], []>} : vector<2x96xf32>, vector<96x10xf32>, vector<2x10xf32> -> vector<2x10xf32>
    %90 = arith.addf %86, %89 : vector<2x10xf32>
    %91 = vector.extract_strided_slice %81 {offsets = [4, 0], sizes = [2, 96], strides = [1, 1]} : vector<16x96xf32> to vector<2x96xf32>
    %c192_64 = arith.constant 192 : index
    %c0_65 = arith.constant 0 : index
    %92 = vector.load %arg10[%c192_64, %c0_65] : memref<768x10xf32, #tpu.memory_space<vmem>>, vector<96x10xf32>
    %cst_66 = arith.constant dense<0.000000e+00> : vector<2x10xf32>
    %93 = tpu.matmul %91, %92, %cst_66 {dimension_numbers = #tpu.dot_dimension_numbers<[1], [0], [0], [1], [0, 0, 1, 1], [], []>} : vector<2x96xf32>, vector<96x10xf32>, vector<2x10xf32> -> vector<2x10xf32>
    %94 = arith.addf %90, %93 : vector<2x10xf32>
    %95 = vector.extract_strided_slice %81 {offsets = [6, 0], sizes = [2, 96], strides = [1, 1]} : vector<16x96xf32> to vector<2x96xf32>
    %c288_67 = arith.constant 288 : index
    %c0_68 = arith.constant 0 : index
    %96 = vector.load %arg10[%c288_67, %c0_68] : memref<768x10xf32, #tpu.memory_space<vmem>>, vector<96x10xf32>
    %cst_69 = arith.constant dense<0.000000e+00> : vector<2x10xf32>
    %97 = tpu.matmul %95, %96, %cst_69 {dimension_numbers = #tpu.dot_dimension_numbers<[1], [0], [0], [1], [0, 0, 1, 1], [], []>} : vector<2x96xf32>, vector<96x10xf32>, vector<2x10xf32> -> vector<2x10xf32>
    %98 = arith.addf %94, %97 : vector<2x10xf32>
    %99 = vector.extract_strided_slice %81 {offsets = [8, 0], sizes = [2, 96], strides = [1, 1]} : vector<16x96xf32> to vector<2x96xf32>
    %c384_70 = arith.constant 384 : index
    %c0_71 = arith.constant 0 : index
    %100 = vector.load %arg10[%c384_70, %c0_71] : memref<768x10xf32, #tpu.memory_space<vmem>>, vector<96x10xf32>
    %cst_72 = arith.constant dense<0.000000e+00> : vector<2x10xf32>
    %101 = tpu.matmul %99, %100, %cst_72 {dimension_numbers = #tpu.dot_dimension_numbers<[1], [0], [0], [1], [0, 0, 1, 1], [], []>} : vector<2x96xf32>, vector<96x10xf32>, vector<2x10xf32> -> vector<2x10xf32>
    %102 = arith.addf %98, %101 : vector<2x10xf32>
    %103 = vector.extract_strided_slice %81 {offsets = [10, 0], sizes = [2, 96], strides = [1, 1]} : vector<16x96xf32> to vector<2x96xf32>
    %c480 = arith.constant 480 : index
    %c0_73 = arith.constant 0 : index
    %104 = vector.load %arg10[%c480, %c0_73] : memref<768x10xf32, #tpu.memory_space<vmem>>, vector<96x10xf32>
    %cst_74 = arith.constant dense<0.000000e+00> : vector<2x10xf32>
    %105 = tpu.matmul %103, %104, %cst_74 {dimension_numbers = #tpu.dot_dimension_numbers<[1], [0], [0], [1], [0, 0, 1, 1], [], []>} : vector<2x96xf32>, vector<96x10xf32>, vector<2x10xf32> -> vector<2x10xf32>
    %106 = arith.addf %102, %105 : vector<2x10xf32>
    %107 = vector.extract_strided_slice %81 {offsets = [12, 0], sizes = [2, 96], strides = [1, 1]} : vector<16x96xf32> to vector<2x96xf32>
    %c576_75 = arith.constant 576 : index
    %c0_76 = arith.constant 0 : index
    %108 = vector.load %arg10[%c576_75, %c0_76] : memref<768x10xf32, #tpu.memory_space<vmem>>, vector<96x10xf32>
    %cst_77 = arith.constant dense<0.000000e+00> : vector<2x10xf32>
    %109 = tpu.matmul %107, %108, %cst_77 {dimension_numbers = #tpu.dot_dimension_numbers<[1], [0], [0], [1], [0, 0, 1, 1], [], []>} : vector<2x96xf32>, vector<96x10xf32>, vector<2x10xf32> -> vector<2x10xf32>
    %110 = arith.addf %106, %109 : vector<2x10xf32>
    %111 = vector.extract_strided_slice %81 {offsets = [14, 0], sizes = [2, 96], strides = [1, 1]} : vector<16x96xf32> to vector<2x96xf32>
    %c672 = arith.constant 672 : index
    %c0_78 = arith.constant 0 : index
    %112 = vector.load %arg10[%c672, %c0_78] : memref<768x10xf32, #tpu.memory_space<vmem>>, vector<96x10xf32>
    %cst_79 = arith.constant dense<0.000000e+00> : vector<2x10xf32>
    %113 = tpu.matmul %111, %112, %cst_79 {dimension_numbers = #tpu.dot_dimension_numbers<[1], [0], [0], [1], [0, 0, 1, 1], [], []>} : vector<2x96xf32>, vector<96x10xf32>, vector<2x10xf32> -> vector<2x10xf32>
    %114 = arith.addf %110, %113 : vector<2x10xf32>
    %c0_80 = arith.constant 0 : index
    %c0_81 = arith.constant 0 : index
    %115 = vector.load %arg11[%c0_80, %c0_81] : memref<1x10xf32, #tpu.memory_space<vmem>>, vector<1x10xf32>
    %116 = vector.broadcast %115 : vector<1x10xf32> to vector<2x10xf32>
    %117 = arith.addf %114, %116 : vector<2x10xf32>
    %c0_82 = arith.constant 0 : index
    %c0_83 = arith.constant 0 : index
    %118 = vector.load %arg12[%c0_82, %c0_83] : memref<2x10xf32, #tpu.memory_space<vmem>>, vector<2x10xf32>
    tpu.vector_store %arg12[%c0_82, %c0_83], %117 {strides = array<i32>} : memref<2x10xf32, #tpu.memory_space<vmem>>, vector<2x10xf32>,
    return
  }
}

</mosaic_0001>

<bundles_post_ra>
// kernel: _forward_impl.1
= control target key start
LH: loop header
LB: loop body
LE: loop exit
PB: predicated region body
PF: predicated region fallthrough
CT: control target
= control target key end

     0   :  { %vm70_vm0 = vcmask 523264   ;;  %s5644_s0 = inlined_call_operand.vmem [shape: f32[64,96], index: 0, kind: input, shape index: {}]   ;;  %s5645_s1 = inlined_call_operand.vmem [shape: f32[160,64], index: 1, kind: input, shape index: {}]   ;;  %s5646_s2 = inlined_call_operand.vmem [shape: f32[480,192], index: 2, kind: input, shape index: {}]   ;;  %s5647_s3 = inlined_call_operand.vmem [shape: f32[1,192], index: 3, kind: input, shape index: {}]   ;;  %s5648_s4 = inlined_call_operand.vmem [shape: f32[80,32], index: 4, kind: input, shape index: {}]   ;;  %s5649_s5 = inlined_call_operand.vmem [shape: f32[960,96], index: 5, kind: input, shape index: {}]   ;;  %s5650_s6 = inlined_call_operand.vmem [shape: f32[1,96], index: 6, kind: input, shape index: {}]   ;;  %s5651_s7 = inlined_call_operand.vmem [shape: f32[80,16], index: 7, kind: input, shape index: {}]   ;;  %s5652_s8 = inlined_call_operand.vmem [shape: f32[480,96], index: 8, kind: input, shape index: {}]   ;;  %s5653_s9 = inlined_call_operand.vmem [shape: f32[1,96], index: 9, kind: input, shape index: {}]   ;;  %s5654_s10 = inlined_call_operand.vmem [shape: f32[768,10], index: 10, kind: input, shape index: {}]   ;;  %s5655_s11 = inlined_call_operand.vmem [shape: f32[1,10], index: 11, kind: input, shape index: {}]   ;;  %s5656_s12 = inlined_call_operand.hbm [shape: f32[2,10], index: 12, kind: output, shape index: {}]  }
   0x1   :  { %v49_v0 = vld [vmem:[%s5644_s0 + $0x38] sm:$0xff]  ;;  %v48_v1 = vld [vmem:[%s5644_s0 + $0x30] sm:$0xff]  ;;  %v47_v2 = vld [vmem:[%s5644_s0 + $0x28] sm:$0xff] }
   0x2   :  { %3347 = vmatprep.subr.mxu0 %v49_v0  ;;  %v50_v3 = vld [vmem:[%s5645_s1] sm:$0xff]  ;;  %v45_v5 = vld [vmem:[%s5644_s0 + $0x18] sm:$0xff]  ;;  %v44_v6 = vld [vmem:[%s5644_s0 + $0x10] sm:$0xff] }
   0x3   :  { %3348 = vmatpush3.msra.mxu0 %v49_v0  ;;  %3363 = vmatprep.mubr.msk.f32.mxu0 %vm70_vm0, %v50_v3  ;;  %v46_v4 = vld [vmem:[%s5644_s0 + $0x20] sm:$0xff]  ;;  %v343_v7 = vld [vmem:[%s5646_s2 + $0x178] sm:$0xff]  ;;  %v342_v8 = vld [vmem:[%s5646_s2 + $0x170] sm:$0xff] }
   0x4   :  { %3349 = vmatprep.subr.mxu0 %v48_v1  ;;  %v43_v9 = vld [vmem:[%s5644_s0 + $0x8] sm:$0xff]  ;;  %365 = vmatprep.subr.mxu1 %v343_v7  ;;  %v340_v11 = vld [vmem:[%s5646_s2 + $0x160] sm:$0xff]  ;;  %v339_v12 = vld [vmem:[%s5646_s2 + $0x158] sm:$0xff] }
   0x5   :  { %3350 = vmatpush3.msra.mxu0 %v48_v1  ;;  %v341_v10 = vld [vmem:[%s5646_s2 + $0x168] sm:$0xff]  ;;  %366 = vmatpush1.msra.mxu1 %v342_v8  ;;  %v42_v13 = vld [vmem:[%s5644_s0] sm:$0xff]  ;;  %v338_v14 = vld [vmem:[%s5646_s2 + $0x150] sm:$0xff] }
   0x6   :  { %3351 = vmatprep.subr.mxu0 %v47_v2  ;;  %367 = vmatprep.subr.mxu1 %v341_v10  ;;  %v337_v15 = vld [vmem:[%s5646_s2 + $0x148] sm:$0xff]  ;;  %v336_v17 = vld [vmem:[%s5646_s2 + $0x140] sm:$0xff] }
   0x7   :  { %3352 = vmatpush3.msra.mxu0 %v47_v2  ;;  %368 = vmatpush1.msra.mxu1 %v340_v11  ;;  %v51_v16 = vld [vmem:[%s5645_s1 + $0x8] sm:$0xff] }
   0x8   :  { %3353 = vmatprep.subr.mxu0 %v46_v4  ;;  %369 = vmatprep.subr.mxu1 %v339_v12 }
   0x9   :  { %3354 = vmatpush3.msra.mxu0 %v46_v4 }
   0xa   :  { %3355 = vmatprep.subr.mxu0 %v45_v5 }
   0xb   :  { %3356 = vmatpush3.msra.mxu0 %v45_v5 }
   0xc   :  { %3357 = vmatprep.subr.mxu0 %v44_v6 }
   0xd   :  { %3358 = vmatpush3.msra.mxu0 %v44_v6 }
   0xe   :  { %3359 = vmatprep.subr.mxu0 %v43_v9 }
   0xf   :  { %3360 = vmatpush3.msra.mxu0 %v43_v9 }
  0x10   :  { %17 = vsyncpa [#allocation3], 0  ;;  %3361 = vmatprep.subr.mxu0 %v42_v13  ;;  %v52_v18 = vld [vmem:[%s5645_s1 + $0x10] sm:$0xff]  ;;  %370 = vmatpush1.msra.mxu1 %v338_v14  ;;  %v335_v19 = vld [vmem:[%s5646_s2 + $0x138] sm:$0xff]  ;;  %v3788_v60 = vmov 0.0   ;;  %vm344_vm1 = vcmask 785408  }
  0x11   :  { %3362 = vmatpush3.msra.mxu0 %v42_v13  ;;  %371 = vmatprep.subr.mxu1 %v337_v15  ;;  %v334_v20 = vld [vmem:[%s5646_s2 + $0x130] sm:$0xff]  ;;  %v333_v21 = vld [vmem:[%s5646_s2 + $0x128] sm:$0xff]  ;;  %v53_v22 = vld [vmem:[%s5645_s1 + $0x18] sm:$0xff]  ;;  %vm992_vm2 = vcmask 261120   ;;  %vm1702_vm3 = vcmask 130048   ;;  %vm3789_vm4 = vmmov 0  }
  0x12   :  { %3364 = vmatmul.mubr.msk.f32.vlgmr.msra.gmra.mxu0 %vm70_vm0, %v51_v16  ;;  %372 = vmatpush1.msra.mxu1 %v336_v17  ;;  %v332_v23 = vld [vmem:[%s5646_s2 + $0x120] sm:$0xff]  ;;  %v331_v25 = vld [vmem:[%s5646_s2 + $0x118] sm:$0xff]  ;;  %v330_v26 = vld [vmem:[%s5646_s2 + $0x110] sm:$0xff]  ;;  %s3790_s23 = smov [#allocation2]   ;;  %vm3026_vm5 = vcmask 74752  }
  0x13   :  { %3366 = vmatprep.mubr.msk.f32.mxu0 %vm70_vm0, %v52_v18  ;;  %373 = vmatprep.subr.mxu1 %v335_v19  ;;  %v54_v24 = vld [vmem:[%s5645_s1 + $0x20] sm:$0xff]  ;;  %v55_v27 = vld [vmem:[%s5645_s1 + $0x28] sm:$0xff]  ;;  %v56_v28 = vld [vmem:[%s5645_s1 + $0x30] sm:$0xff]  ;;  %s3034_s24 = sshll.u32 %s3790_s23, 4  ;;  %s3035_s24 = int_to_ptr.vmem [resolvable:$true] %s3034_s24 }
  0x14   :  { %374 = vmatpush1.msra.mxu1 %v334_v20  ;;  %v57_v29 = vld [vmem:[%s5645_s1 + $0x38] sm:$0xff]  ;;  %v58_v30 = vld [vmem:[%s5645_s1 + $0x40] sm:$0xff]  ;;  %v59_v31 = vld [vmem:[%s5645_s1 + $0x48] sm:$0xff]  ;;  %421 = vmatprep.mubr.f32.mxu1 %v3788_v60  ;;  %s3766_s25 = scalar_lea.vmem %s3035_s24, 32  ;;  %p3771_p1 = scmp.lt.s32.totalorder %s3035_s24, %s3035_s24 }
  0x15   :  { %375 = vmatprep.subr.mxu1 %v333_v21  ;;  %v60_v32 = vld [vmem:[%s5645_s1 + $0x50] sm:$0xff]  ;;  %v61_v33 = vld [vmem:[%s5645_s1 + $0x58] sm:$0xff]  ;;  %v62_v34 = vld [vmem:[%s5645_s1 + $0x60] sm:$0xff]  ;;  %p3767_p0 = scmp.ne.s32.totalorder %s3035_s24, %s3766_s25  ;;  %p3772_p2 = scmp.lt.s32.totalorder %s3766_s25, %s3766_s25 }
  0x16   :  { %3367 = vmatmul.mubr.msk.f32.gmra.mxu0 %vm70_vm0, %v53_v22  ;;  %376 = vmatpush1.msra.mxu1 %v332_v23  ;;  %v63_v35 = vld [vmem:[%s5645_s1 + $0x68] sm:$0xff]  ;;  %v64_v36 = vld [vmem:[%s5645_s1 + $0x70] sm:$0xff]  ;;  %v65_v37 = vld [vmem:[%s5645_s1 + $0x78] sm:$0xff] }
  0x17   :  { %3369 = vmatprep.mubr.msk.f32.mxu0 %vm70_vm0, %v54_v24  ;;  %377 = vmatprep.subr.mxu1 %v331_v25  ;;  %v66_v38 = vld [vmem:[%s5645_s1 + $0x80] sm:$0xff]  ;;  %v67_v39 = vld [vmem:[%s5645_s1 + $0x88] sm:$0xff]  ;;  %v68_v40 = vld [vmem:[%s5645_s1 + $0x90] sm:$0xff]  ;;  %p3773_p3 = por %p3772_p2, %p3771_p1 }
  0x18   :  { %378 = vmatpush1.msra.mxu1 %v330_v26  ;;  %v69_v41 = vld [vmem:[%s5645_s1 + $0x98] sm:$0xff]  ;;  %v329_v42 = vld [vmem:[%s5646_s2 + $0x108] sm:$0xff]  ;;  %v328_v43 = vld [vmem:[%s5646_s2 + $0x100] sm:$0xff] }
  0x19   :  { %379 = vmatprep.subr.mxu1 %v329_v42  ;;  %v327_v44 = vld [vmem:[%s5646_s2 + $0xf8] sm:$0xff]  ;;  %v326_v45 = vld [vmem:[%s5646_s2 + $0xf0] sm:$0xff]  ;;  %v325_v46 = vld [vmem:[%s5646_s2 + $0xe8] sm:$0xff]  ;;  %p3774_p4 = pnand %p3773_p3, %p3767_p0 }
  0x1a   :  { %3370 = vmatmul.mubr.msk.f32.gmra.mxu0 %vm70_vm0, %v55_v27  ;;  %380 = vmatpush1.msra.mxu1 %v328_v43  ;;  %v570_v47 = vld [vmem:[%s5646_s2 + $0x238] sm:$0xff]  ;;  %v324_v48 = vld [vmem:[%s5646_s2 + $0xe0] sm:$0xff]  ;;  %v569_v49 = vld [vmem:[%s5646_s2 + $0x230] sm:$0xff] }
  0x1b   :  { %3372 = vmatprep.mubr.msk.f32.mxu0 %vm70_vm0, %v56_v28  ;;  %381 = vmatprep.subr.mxu1 %v327_v44  ;;  %v323_v50 = vld [vmem:[%s5646_s2 + $0xd8] sm:$0xff]  ;;  %v568_v51 = vld [vmem:[%s5646_s2 + $0x228] sm:$0xff]  ;;  %v322_v52 = vld [vmem:[%s5646_s2 + $0xd0] sm:$0xff] }
  0x1c   :  { %382 = vmatpush1.msra.mxu1 %v326_v45  ;;  %591 = vmatprep.subr.mxu0 %v570_v47  ;;  %v567_v53 = vld [vmem:[%s5646_s2 + $0x220] sm:$0xff]  ;;  %v321_v54 = vld [vmem:[%s5646_s2 + $0xc8] sm:$0xff]  ;;  %v566_v55 = vld [vmem:[%s5646_s2 + $0x218] sm:$0xff] }
  0x1d   :  { %383 = vmatprep.subr.mxu1 %v325_v46  ;;  %592 = vmatpush1.msra.mxu0 %v569_v49  ;;  %v320_v56 = vld [vmem:[%s5646_s2 + $0xc0] sm:$0xff]  ;;  %v565_v57 = vld [vmem:[%s5646_s2 + $0x210] sm:$0xff]  ;;  %v319_v58 = vld [vmem:[%s5646_s2 + $0xb8] sm:$0xff] }
  0x1e   :  { %3373 = vmatmul.mubr.msk.f32.gmra.mxu0 %vm70_vm0, %v57_v29  ;;  %384 = vmatpush1.msra.mxu1 %v324_v48  ;;  %v564_v59 = vld [vmem:[%s5646_s2 + $0x208] sm:$0xff]  ;;  %v563_v61 = vld [vmem:[%s5646_s2 + $0x200] sm:$0xff]  ;;  %v562_v62 = vld [vmem:[%s5646_s2 + $0x1f8] sm:$0xff] }
  0x1f   :  { %3375 = vmatprep.mubr.msk.f32.mxu0 %vm70_vm0, %v58_v30  ;;  %385 = vmatprep.subr.mxu1 %v323_v50  ;;  %v561_v63 = vld [vmem:[%s5646_s2 + $0x1f0] sm:$0xff]  ;;  %v560_v0 = vld [vmem:[%s5646_s2 + $0x1e8] sm:$0xff]  ;;  %v559_v1 = vld [vmem:[%s5646_s2 + $0x1e0] sm:$0xff] }
  0x20   :  { %593 = vmatprep.subr.mxu0 %v568_v51  ;;  %386 = vmatpush1.msra.mxu1 %v322_v52  ;;  %v558_v2 = vld [vmem:[%s5646_s2 + $0x1d8] sm:$0xff]  ;;  %v557_v3 = vld [vmem:[%s5646_s2 + $0x1d0] sm:$0xff]  ;;  %v556_v4 = vld [vmem:[%s5646_s2 + $0x1c8] sm:$0xff] }
  0x21   :  { %594 = vmatpush1.msra.mxu0 %v567_v53  ;;  %387 = vmatprep.subr.mxu1 %v321_v54  ;;  %v555_v5 = vld [vmem:[%s5646_s2 + $0x1c0] sm:$0xff]  ;;  %v554_v6 = vld [vmem:[%s5646_s2 + $0x1b8] sm:$0xff]  ;;  %v553_v7 = vld [vmem:[%s5646_s2 + $0x1b0] sm:$0xff] }
  0x22   :  { %3376 = vmatmul.mubr.msk.f32.gmra.mxu0 %vm70_vm0, %v59_v31  ;;  %595 = vmatprep.subr.mxu0 %v566_v55  ;;  %v552_v8 = vld [vmem:[%s5646_s2 + $0x1a8] sm:$0xff]  ;;  %v551_v9 = vld [vmem:[%s5646_s2 + $0x1a0] sm:$0xff]  ;;  %v550_v10 = vld [vmem:[%s5646_s2 + $0x198] sm:$0xff] }
  0x23   :  { %3378 = vmatprep.mubr.msk.f32.mxu0 %vm70_vm0, %v60_v32  ;;  %388 = vmatpush1.msra.mxu1 %v320_v56  ;;  %v549_v11 = vld [vmem:[%s5646_s2 + $0x190] sm:$0xff]  ;;  %v548_v12 = vld [vmem:[%s5646_s2 + $0x188] sm:$0xff]  ;;  %v547_v13 = vld [vmem:[%s5646_s2 + $0x180] sm:$0xff] }
  0x24   :  { %596 = vmatpush1.msra.mxu0 %v565_v57  ;;  %466 = vmatprep.subr.mxu1 %v319_v58  ;;  %v836_v14 = vld [vmem:[%s5646_s2 + $0x3b8] sm:$0xff]  ;;  %v318_v20 = vld [vmem:[%s5646_s2 + $0xb0] sm:$0xff]  ;;  %v317_v22 = vld [vmem:[%s5646_s2 + $0xa8] sm:$0xff] }
  0x25   :  { %597 = vmatprep.subr.mxu0 %v564_v59  ;;  %v316_v23 = vld [vmem:[%s5646_s2 + $0xa0] sm:$0xff]  ;;  %v315_v24 = vld [vmem:[%s5646_s2 + $0x98] sm:$0xff]  ;;  %v314_v26 = vld [vmem:[%s5646_s2 + $0x90] sm:$0xff] }
  0x26   :  { %3379 = vmatmul.mubr.msk.f32.gmra.mxu0 %vm70_vm0, %v61_v33  ;;  %v313_v27 = vld [vmem:[%s5646_s2 + $0x88] sm:$0xff]  ;;  %v312_v29 = vld [vmem:[%s5646_s2 + $0x80] sm:$0xff]  ;;  %v311_v30 = vld [vmem:[%s5646_s2 + $0x78] sm:$0xff] }
  0x27   :  { %3381 = vmatprep.mubr.msk.f32.mxu0 %vm70_vm0, %v62_v34  ;;  %598 = vmatpush1.msra.mxu0 %v563_v61  ;;  %v310_v32 = vld [vmem:[%s5646_s2 + $0x70] sm:$0xff]  ;;  %v309_v33 = vld [vmem:[%s5646_s2 + $0x68] sm:$0xff]  ;;  %v304_v42 = vld [vmem:[%s5646_s2 + $0x40] sm:$0xff] }
  0x28   :  { %599 = vmatprep.subr.mxu0 %v562_v62  ;;  %v303_v43 = vld [vmem:[%s5646_s2 + $0x38] sm:$0xff]  ;;  %v302_v45 = vld [vmem:[%s5646_s2 + $0x30] sm:$0xff]  ;;  %v301_v46 = vld [vmem:[%s5646_s2 + $0x28] sm:$0xff] }
  0x29   :  { %600 = vmatpush1.msra.mxu0 %v561_v63  ;;  %v832_v44 = vld [vmem:[%s5646_s2 + $0x398] sm:$0xff]  ;;  %v300_v48 = vld [vmem:[%s5646_s2 + $0x20] sm:$0xff]  ;;  %v831_v49 = vld [vmem:[%s5646_s2 + $0x390] sm:$0xff] }
  0x2a   :  { %3382 = vmatmul.mubr.msk.f32.gmra.mxu0 %vm70_vm0, %v63_v35  ;;  %601 = vmatprep.subr.mxu0 %v560_v0  ;;  %v308_v35 = vld [vmem:[%s5646_s2 + $0x60] sm:$0xff]  ;;  %v299_v50 = vld [vmem:[%s5646_s2 + $0x18] sm:$0xff]  ;;  %v830_v51 = vld [vmem:[%s5646_s2 + $0x388] sm:$0xff] }
  0x2b   :  { %3384 = vmatprep.mubr.msk.f32.mxu0 %vm70_vm0, %v64_v36  ;;  %602 = vmatpush1.msra.mxu0 %v559_v1  ;;  %v835_v36 = vld [vmem:[%s5646_s2 + $0x3b0] sm:$0xff]  ;;  %v829_v53 = vld [vmem:[%s5646_s2 + $0x380] sm:$0xff]  ;;  %v297_v54 = vld [vmem:[%s5646_s2 + $0x8] sm:$0xff] }
  0x2c   :  { %603 = vmatprep.subr.mxu0 %v558_v2  ;;  %v298_v52 = vld [vmem:[%s5646_s2 + $0x10] sm:$0xff]  ;;  %v828_v55 = vld [vmem:[%s5646_s2 + $0x378] sm:$0xff]  ;;  %v296_v57 = vld [vmem:[%s5646_s2] sm:$0xff] }
  0x2d   :  { %604 = vmatpush1.msra.mxu0 %v557_v3  ;;  %v827_v58 = vld [vmem:[%s5646_s2 + $0x370] sm:$0xff]  ;;  %v703_v59 = vld [vmem:[%s5646_s2 + $0x2f8] sm:$0xff]  ;;  %v701_v62 = vld [vmem:[%s5646_s2 + $0x2e8] sm:$0xff] }
  0x2e   :  { %3385 = vmatmul.mubr.msk.f32.gmra.mxu0 %vm70_vm0, %v65_v37  ;;  %605 = vmatprep.subr.mxu0 %v556_v4  ;;  %v307_v37 = vld [vmem:[%s5646_s2 + $0x58] sm:$0xff]  ;;  %v702_v61 = vld [vmem:[%s5646_s2 + $0x2f0] sm:$0xff]  ;;  %v826_v63 = vld [vmem:[%s5646_s2 + $0x368] sm:$0xff] }
  0x2f   :  { %3387 = vmatprep.mubr.msk.f32.mxu0 %vm70_vm0, %v66_v38  ;;  %606 = vmatpush1.msra.mxu0 %v555_v5  ;;  %v306_v38 = vld [vmem:[%s5646_s2 + $0x50] sm:$0xff]  ;;  %v700_v1 = vld [vmem:[%s5646_s2 + $0x2e0] sm:$0xff]  ;;  %v699_v2 = vld [vmem:[%s5646_s2 + $0x2d8] sm:$0xff] }
  0x30   :  { %607 = vmatprep.subr.mxu0 %v554_v6  ;;  %v698_v3 = vld [vmem:[%s5646_s2 + $0x2d0] sm:$0xff]  ;;  %v825_v4 = vld [vmem:[%s5646_s2 + $0x360] sm:$0xff]  ;;  %v697_v5 = vld [vmem:[%s5646_s2 + $0x2c8] sm:$0xff] }
  0x31   :  { %608 = vmatpush1.msra.mxu0 %v553_v7  ;;  %v824_v7 = vld [vmem:[%s5646_s2 + $0x358] sm:$0xff] }
  0x32   :  { %3388 = vmatmul.mubr.msk.f32.gmra.mxu0 %vm70_vm0, %v67_v39  ;;  %609 = vmatprep.subr.mxu0 %v552_v8  ;;  %v834_v39 = vld [vmem:[%s5646_s2 + $0x3a8] sm:$0xff]  ;;  %v696_v8 = vld [vmem:[%s5646_s2 + $0x2c0] sm:$0xff] }
  0x33   :  { %3390 = vmatprep.mubr.msk.f32.mxu0 %vm70_vm0, %v68_v40  ;;  %610 = vmatpush1.msra.mxu0 %v551_v9  ;;  %v305_v40 = vld [vmem:[%s5646_s2 + $0x48] sm:$0xff]  ;;  %v823_v9 = vld [vmem:[%s5646_s2 + $0x350] sm:$0xff] }
  0x34   :  { %611 = vmatprep.subr.mxu0 %v550_v10  ;;  %v695_v10 = vld [vmem:[%s5646_s2 + $0x2b8] sm:$0xff] }
  0x35   :  { %612 = vmatpush1.msra.mxu0 %v549_v11  ;;  %v822_v11 = vld [vmem:[%s5646_s2 + $0x348] sm:$0xff] }
  0x36   :  { %3391 = vmatmul.mubr.msk.f32.gmra.mxu0 %vm70_vm0, %v69_v41  ;;  %613 = vmatprep.subr.mxu0 %v548_v12  ;;  %v833_v41 = vld [vmem:[%s5646_s2 + $0x3a0] sm:$0xff] }
  0x37   :  { %647 = vmatprep.mubr.f32.mxu0 %v3788_v60  ;;  %614 = vmatpush1.msra.mxu0 %v547_v13  ;;  %v694_v13 = vld [vmem:[%s5646_s2 + $0x2b0] sm:$0xff] }
  0x38   :  { %857 = vmatprep.subr.mxu0 %v836_v14  ;;  %v821_v14 = vld [vmem:[%s5646_s2 + $0x340] sm:$0xff] }
  0xd2   :  { %v4112_v15 = vpop.f32.mrf.mxu0 }
  0xd4   :  { %v4114_v16 = vpop.f32.mrf.mxu0 }
  0xd6   :  { %v4116_v17 = vpop.f32.mrf.mxu0 }
  0xd8   :  { %v4118_v18 = vpop.f32.mrf.mxu0 }
  0xda   :  { %v3371_v19 = vpop.f32.mrf.mxu0 }
  0xdc   :  { %v217_v21 = vpop.f32.mrf.mxu0 }
  0xdd   :  { %3062 = vmatmul.mubr.msk.f32.vlgmr.msra.gmra.mxu1 %vm344_vm1, %v217_v21  ;;  %v691_v21 = vld [vmem:[%s5646_s2 + $0x298] sm:$0xff] }
  0xde   :  { %467 = vmatpush1.msra.mxu1 %v318_v20  ;;  %427 = vmatprep.mubr.f32.mxu1 %v3788_v60  ;;  %v3374_v25 = vpop.f32.mrf.mxu0 }
  0xdf   :  { %468 = vmatprep.subr.mxu1 %v317_v22  ;;  %v818_v22 = vld [vmem:[%s5646_s2 + $0x328] sm:$0xff] }
  0xe0   :  { %469 = vmatpush1.msra.mxu1 %v316_v23  ;;  %v227_v28 = vpop.f32.mrf.mxu0  ;;  %v690_v23 = vld [vmem:[%s5646_s2 + $0x290] sm:$0xff] }
  0xe1   :  { %470 = vmatprep.subr.mxu1 %v315_v24  ;;  %3063 = vmatmul.mubr.msk.f32.gmra.mxu1 %vm344_vm1, %v3371_v19  ;;  %v692_v19 = vld [vmem:[%s5646_s2 + $0x2a0] sm:$0xff] }
  0xe2   :  { %471 = vmatpush1.msra.mxu1 %v314_v26  ;;  %433 = vmatprep.mubr.f32.mxu1 %v3788_v60  ;;  %v3377_v31 = vpop.f32.mrf.mxu0  ;;  %v817_v24 = vld [vmem:[%s5646_s2 + $0x320] sm:$0xff]  ;;  %v816_v26 = vld [vmem:[%s5646_s2 + $0x318] sm:$0xff] }
  0xe3   :  { %472 = vmatprep.subr.mxu1 %v313_v27 }
  0xe4   :  { %473 = vmatpush1.msra.mxu1 %v312_v29  ;;  %v237_v34 = vpop.f32.mrf.mxu0  ;;  %v815_v29 = vld [vmem:[%s5646_s2 + $0x310] sm:$0xff] }
  0xe5   :  { %474 = vmatprep.subr.mxu1 %v311_v30  ;;  %3064 = vmatmul.mubr.msk.f32.gmra.mxu1 %vm344_vm1, %v227_v28  ;;  %v688_v28 = vld [vmem:[%s5646_s2 + $0x280] sm:$0xff]  ;;  %v814_v30 = vld [vmem:[%s5646_s2 + $0x308] sm:$0xff] }
  0xe6   :  { %475 = vmatpush1.msra.mxu1 %v310_v32  ;;  %439 = vmatprep.mubr.f32.mxu1 %v3788_v60  ;;  %v4195_v47 = vpop.f32.mrf.mxu0  ;;  %v813_v32 = vld [vmem:[%s5646_s2 + $0x300] sm:$0xff] }
  0xe7   :  { %476 = vmatprep.subr.mxu1 %v309_v33  ;;  %3070 = vmatmul.mubr.msk.f32.vlgmr.msra.gmra.mxu0 %vm344_vm1, %v237_v34  ;;  %v685_v34 = vld [vmem:[%s5646_s2 + $0x268] sm:$0xff] }
  0xe8   :  { %477 = vmatpush1.msra.mxu1 %v308_v35  ;;  %858 = vmatpush1.msra.mxu0 %v835_v36  ;;  %v247_v56 = vpop.f32.mrf.mxu0  ;;  %v684_v35 = vld [vmem:[%s5646_s2 + $0x260] sm:$0xff]  ;;  %v683_v36 = vld [vmem:[%s5646_s2 + $0x258] sm:$0xff] }
  0xe9   :  { %478 = vmatprep.subr.mxu1 %v307_v37  ;;  %3065 = vmatmul.mubr.msk.f32.gmra.mxu1 %vm344_vm1, %v3374_v25  ;;  %v689_v25 = vld [vmem:[%s5646_s2 + $0x288] sm:$0xff]  ;;  %v682_v37 = vld [vmem:[%s5646_s2 + $0x250] sm:$0xff] }
  0xea   :  { %479 = vmatpush1.msra.mxu1 %v306_v38  ;;  %859 = vmatprep.subr.mxu0 %v834_v39  ;;  %v4241_v0 = vpop.f32.mrf.mxu0  ;;  %v681_v38 = vld [vmem:[%s5646_s2 + $0x248] sm:$0xff] }
  0xeb   :  { %480 = vmatprep.subr.mxu1 %v305_v40  ;;  %860 = vmatpush1.msra.mxu0 %v833_v41  ;;  %v680_v40 = vld [vmem:[%s5646_s2 + $0x240] sm:$0xff] }
  0xec   :  { %481 = vmatpush1.msra.mxu1 %v304_v42  ;;  %653 = vmatprep.mubr.f32.mxu0 %v3788_v60  ;;  %v4262_v6 = vpop.f32.mrf.mxu0  ;;  %v1187_v42 = vld [vmem:[%s5649_s5 + $0x138] sm:$0xff] }
  0xed   :  { %482 = vmatprep.subr.mxu1 %v303_v43  ;;  %861 = vmatprep.subr.mxu0 %v832_v44  ;;  %v1186_v43 = vld [vmem:[%s5649_s5 + $0x130] sm:$0xff]  ;;  %v1185_v44 = vld [vmem:[%s5649_s5 + $0x128] sm:$0xff] }
  0xee   :  { %483 = vmatpush1.msra.mxu1 %v302_v45  ;;  %522 = vmatprep.mubr.f32.mxu1 %v3788_v60  ;;  %v4283_v12 = vpop.f32.mrf.mxu0  ;;  %v1184_v45 = vld [vmem:[%s5649_s5 + $0x120] sm:$0xff] }
  0xef   :  { %484 = vmatprep.subr.mxu1 %v301_v46  ;;  %3071 = vmatmul.mubr.msk.f32.gmra.mxu0 %vm344_vm1, %v3377_v31  ;;  %v686_v31 = vld [vmem:[%s5646_s2 + $0x270] sm:$0xff] }
  0xf0   :  { %485 = vmatpush1.msra.mxu1 %v300_v48  ;;  %862 = vmatpush1.msra.mxu0 %v831_v49  ;;  %v267_v20 = vpop.f32.mrf.mxu0  ;;  %v1182_v49 = vld [vmem:[%s5649_s5 + $0x110] sm:$0xff] }
  0xf1   :  { %486 = vmatprep.subr.mxu1 %v299_v50  ;;  %863 = vmatprep.subr.mxu0 %v830_v51  ;;  %v1181_v51 = vld [vmem:[%s5649_s5 + $0x108] sm:$0xff] }
  0xf2   :  { %487 = vmatpush1.msra.mxu1 %v298_v52  ;;  %864 = vmatpush1.msra.mxu0 %v829_v53  ;;  %v3389_v27 = vpop.f32.mrf.mxu0  ;;  %v1180_v53 = vld [vmem:[%s5649_s5 + $0x100] sm:$0xff] }
  0xf3   :  { %488 = vmatprep.subr.mxu1 %v297_v54  ;;  %865 = vmatprep.subr.mxu0 %v828_v55  ;;  %v1179_v54 = vld [vmem:[%s5649_s5 + $0xf8] sm:$0xff] }
  0xf4   :  { %489 = vmatpush1.msra.mxu1 %v296_v57  ;;  %866 = vmatpush1.msra.mxu0 %v827_v58  ;;  %v277_v33 = vpop.f32.mrf.mxu0  ;;  %v1177_v57 = vld [vmem:[%s5649_s5 + $0xe8] sm:$0xff] }
  0xf5   :  { %3066 = vmatmul.mubr.msk.f32.vlgmr.msra.gmra.mxu1 %vm344_vm1, %v4114_v16  ;;  %724 = vmatprep.subr.mxu1 %v703_v59  ;;  %v820_v16 = vld [vmem:[%s5646_s2 + $0x338] sm:$0xff]  ;;  %v1176_v59 = vld [vmem:[%s5649_s5 + $0xe0] sm:$0xff] }
  0xf6   :  { %725 = vmatpush1.msra.mxu1 %v702_v61  ;;  %528 = vmatprep.mubr.f32.mxu1 %v3788_v60  ;;  %v3392_v39 = vpop.f32.mrf.mxu0  ;;  %v1175_v61 = vld [vmem:[%s5649_s5 + $0xd8] sm:$0xff] }
  0xf7   :  { %726 = vmatprep.subr.mxu1 %v701_v62  ;;  %867 = vmatprep.subr.mxu0 %v826_v63 }
  0xf8   :  { %727 = vmatpush1.msra.mxu1 %v700_v1  ;;  %659 = vmatprep.mubr.f32.mxu0 %v3788_v60  ;;  %v287_v41 = vpop.f32.mrf.mxu0  ;;  %v1173_v1 = vld [vmem:[%s5649_s5 + $0xc8] sm:$0xff] }
  0xf9   :  { %3067 = vmatmul.mubr.msk.f32.gmra.mxu1 %vm344_vm1, %v4112_v15  ;;  %728 = vmatprep.subr.mxu1 %v699_v2  ;;  %v693_v15 = vld [vmem:[%s5646_s2 + $0x2a8] sm:$0xff] }
  0xfa   :  { %729 = vmatpush1.msra.mxu1 %v698_v3  ;;  %868 = vmatpush1.msra.mxu0 %v825_v4  ;;  %v1172_v4 = vld [vmem:[%s5649_s5 + $0xc0] sm:$0xff] }
  0xfb   :  { %3072 = vmatmul.mubr.msk.f32.gmra.mxu0 %vm344_vm1, %v247_v56  ;;  %730 = vmatprep.subr.mxu1 %v697_v5  ;;  %v1178_v56 = vld [vmem:[%s5649_s5 + $0xf0] sm:$0xff] }
  0xfc   :  { %869 = vmatprep.subr.mxu0 %v824_v7  ;;  %534 = vmatprep.mubr.f32.mxu1 %v3788_v60 }
  0xfd   :  { %731 = vmatpush1.msra.mxu1 %v696_v8  ;;  %870 = vmatpush1.msra.mxu0 %v823_v9  ;;  %v1194_v9 = vld [vmem:[%s5649_s5 + $0x170] sm:$0xff] }
  0xfe   :  { %3068 = vmatmul.mubr.msk.f32.gmra.mxu1 %vm344_vm1, %v4118_v18  ;;  %732 = vmatprep.subr.mxu1 %v695_v10  ;;  %v819_v18 = vld [vmem:[%s5646_s2 + $0x330] sm:$0xff] }
  0xff   :  { %871 = vmatprep.subr.mxu0 %v822_v11  ;;  %665 = vmatprep.mubr.f32.mxu0 %v3788_v60 }
 0x100   :  { %733 = vmatpush1.msra.mxu1 %v694_v13  ;;  %872 = vmatpush1.msra.mxu0 %v821_v14 }
 0x101   :  { %3073 = vmatmul.mubr.msk.f32.gmra.mxu0 %vm344_vm1, %v4195_v47  ;;  %734 = vmatprep.subr.mxu1 %v693_v15  ;;  %v1183_v47 = vld [vmem:[%s5649_s5 + $0x118] sm:$0xff] }
 0x102   :  { %873 = vmatprep.subr.mxu0 %v820_v16  ;;  %540 = vmatprep.mubr.f32.mxu1 %v3788_v60 }
 0x103   :  { %735 = vmatpush1.msra.mxu1 %v692_v19  ;;  %874 = vmatpush1.msra.mxu0 %v819_v18 }
 0x104   :  { %3069 = vmatmul.mubr.msk.f32.gmra.mxu1 %vm344_vm1, %v4116_v17  ;;  %736 = vmatprep.subr.mxu1 %v691_v21  ;;  %v687_v17 = vld [vmem:[%s5646_s2 + $0x278] sm:$0xff] }
 0x105   :  { %875 = vmatprep.subr.mxu0 %v818_v22  ;;  %737 = vmatpush1.msra.mxu1 %v690_v23 }
 0x106   :  { %876 = vmatpush1.msra.mxu0 %v817_v24  ;;  %738 = vmatprep.subr.mxu1 %v689_v25 }
 0x107   :  { %877 = vmatprep.subr.mxu0 %v816_v26  ;;  %739 = vmatpush1.msra.mxu1 %v688_v28 }
 0x108   :  { %878 = vmatpush1.msra.mxu0 %v815_v29  ;;  %740 = vmatprep.subr.mxu1 %v687_v17 }
 0x109   :  { %879 = vmatprep.subr.mxu0 %v814_v30  ;;  %741 = vmatpush1.msra.mxu1 %v686_v31 }
 0x10a   :  { %880 = vmatpush1.msra.mxu0 %v813_v32  ;;  %913 = vmatprep.mubr.f32.mxu0 %v3788_v60 }
 0x10b   :  { %742 = vmatprep.subr.mxu1 %v685_v34  ;;  %3078 = vmatmul.mubr.msk.f32.vlgmr.msra.gmra.mxu0 %vm344_vm1, %v277_v33 }
 0x10c   :  { %743 = vmatpush1.msra.mxu1 %v684_v35  ;;  %919 = vmatprep.mubr.f32.mxu0 %v3788_v60 }
 0x10d   :  { %744 = vmatprep.subr.mxu1 %v683_v36  ;;  %780 = vmatprep.mubr.f32.mxu1 %v3788_v60 }
 0x10e   :  { %745 = vmatpush1.msra.mxu1 %v682_v37  ;;  %1202 = vmatprep.subr.mxu0 %v3788_v60 }
 0x10f   :  { %746 = vmatprep.subr.mxu1 %v681_v38  ;;  %3079 = vmatmul.mubr.msk.f32.gmra.mxu0 %vm344_vm1, %v3389_v27  ;;  %v948_v27 = vlaneseq }
 0x110   :  { %747 = vmatpush1.msra.mxu1 %v680_v40  ;;  %925 = vmatprep.mubr.f32.mxu0 %v3788_v60 }
 0x111   :  { %3074 = vmatmul.mubr.msk.f32.vlgmr.msra.gmra.mxu1 %vm344_vm1, %v4262_v6  ;;  %1203 = vmatpush1.msra.mxu0 %v1187_v42  ;;  %v1195_v6 = vld [vmem:[%s5649_s5 + $0x178] sm:$0xff]  ;;  %v949_v34 = vshrl.u32 %v948_v27, 7 }
 0x112   :  { %786 = vmatprep.mubr.f32.mxu1 %v3788_v60  ;;  %1204 = vmatprep.subr.mxu0 %v3788_v60 }
 0x113   :  { %3080 = vmatmul.mubr.msk.f32.gmra.mxu0 %vm344_vm1, %v287_v41 }
 0x114   :  { %931 = vmatprep.mubr.f32.mxu0 %v3788_v60  ;;  %1205 = vmatpush1.msra.mxu0 %v1186_v43 }
 0x115   :  { %3075 = vmatmul.mubr.msk.f32.gmra.mxu1 %vm344_vm1, %v4241_v0  ;;  %1206 = vmatprep.subr.mxu0 %v3788_v60  ;;  %v1174_v0 = vld [vmem:[%s5649_s5 + $0xd0] sm:$0xff] }
 0x116   :  { %792 = vmatprep.mubr.f32.mxu1 %v3788_v60  ;;  %1207 = vmatpush1.msra.mxu0 %v1185_v44 }
 0x117   :  { %3081 = vmatmul.mubr.msk.f32.gmra.mxu0 %vm344_vm1, %v3392_v39  ;;  %1208 = vmatprep.subr.mxu0 %v3788_v60 }
 0x118   :  { %1209 = vmatpush1.msra.mxu0 %v1184_v45  ;;  %v950_v45 = vsub.s32 0, %v949_v34 }
 0x119   :  { %3076 = vmatmul.mubr.msk.f32.gmra.mxu1 %vm344_vm1, %v267_v20  ;;  %1210 = vmatprep.subr.mxu0 %v3788_v60 }
 0x11a   :  { %798 = vmatprep.mubr.f32.mxu1 %v3788_v60  ;;  %1211 = vmatpush1.msra.mxu0 %v1183_v47  ;;  %v954_v47 = vsub.s32 1, %v949_v34 }
 0x11b   :  { %1212 = vmatprep.subr.mxu0 %v3788_v60 }
 0x11c   :  { %1213 = vmatpush1.msra.mxu0 %v1182_v49 }
 0x11d   :  { %3077 = vmatmul.mubr.msk.f32.gmra.mxu1 %vm344_vm1, %v4283_v12  ;;  %1214 = vmatprep.subr.mxu0 %v3788_v60 }
 0x11e   :  { %1087 = vmatprep.mubr.f32.mxu1 %v3788_v60  ;;  %1215 = vmatpush1.msra.mxu0 %v1181_v51 }
 0x11f   :  { %1216 = vmatprep.subr.mxu0 %v3788_v60 }
 0x120   :  { %1217 = vmatpush1.msra.mxu0 %v1180_v53 }
 0x121   :  { %1218 = vmatprep.subr.mxu0 %v3788_v60 }
 0x122   :  { %1219 = vmatpush1.msra.mxu0 %v1179_v54 }
 0x123   :  { %1220 = vmatprep.subr.mxu0 %v3788_v60 }
 0x124   :  { %1221 = vmatpush1.msra.mxu0 %v1178_v56 }
 0x125   :  { %1222 = vmatprep.subr.mxu0 %v3788_v60 }
 0x126   :  { %1223 = vmatpush1.msra.mxu0 %v1177_v57 }
 0x127   :  { %1224 = vmatprep.subr.mxu0 %v3788_v60 }
 0x128   :  { %1225 = vmatpush1.msra.mxu0 %v1176_v59 }
 0x129   :  { %1226 = vmatprep.subr.mxu0 %v3788_v60 }
 0x12a   :  { %1227 = vmatpush1.msra.mxu0 %v1175_v61 }
 0x12b   :  { %1228 = vmatprep.subr.mxu0 %v3788_v60 }
 0x12c   :  { %1229 = vmatpush1.msra.mxu0 %v1174_v0 }
 0x12d   :  { %1230 = vmatprep.subr.mxu0 %v3788_v60 }
 0x12e   :  { %1231 = vmatpush1.msra.mxu0 %v1173_v1 }
 0x12f   :  { %1232 = vmatprep.subr.mxu0 %v3788_v60 }
 0x130   :  { %1233 = vmatpush1.msra.mxu0 %v1172_v4 }
 0x131   :  { %1250 = vmatprep.subr.mxu0 %v3788_v60 }
 0x132   :  { %1251 = vmatpush2.msra.mxu0 %v1195_v6 }
 0x133   :  { %1252 = vmatprep.subr.mxu0 %v3788_v60 }
 0x134   :  { %1253 = vmatpush2.msra.mxu0 %v1194_v9 }
 0x135   :  { %1254 = vmatprep.subr.mxu0 %v3788_v60 }
 0x19d   :  { %v4400_v46 = vpop.f32.mrf.mxu1 }
 0x19f   :  { %v4406_v48 = vpop.f32.mrf.mxu1 }
 0x1a1   :  { %v4412_v50 = vpop.f32.mrf.mxu1 }
 0x1a3   :  { %v4418_v52 = vpop.f32.mrf.mxu1 }
 0x1a5   :  { %v435_v55 = vpop.f32.mrf.mxu1 }
 0x1a7   :  { %v437_v58 = vpop.f32.mrf.mxu1  ;;  %v4444_v63 = vpop.f32.mrf.mxu0 }
 0x1a9   :  { %v441_v62 = vpop.f32.mrf.mxu1  ;;  %v651_v3 = vpop.f32.mrf.mxu0 }
 0x1ab   :  { %v443_v2 = vpop.f32.mrf.mxu1 }
 0x1af   :  { %v655_v7 = vpop.f32.mrf.mxu0 }
 0x1b1   :  { %v657_v10 = vpop.f32.mrf.mxu0 }
 0x1b5   :  { %v524_v5 = vpop.f32.mrf.mxu1 }
 0x1b6   :  { %v525_v38 = vadd.f32 %v524_v5, %v4400_v46 }
 0x1b7   :  { %v526_v8 = vpop.f32.mrf.mxu1 }
 0x1b8   :  { %v527_v36 = vadd.f32 %v526_v8, %v4406_v48  ;;  %v672_v46 = vadd.f32 %v4444_v63, %v525_v38  ;;  %v1163_v38 = vld [vmem:[%s5649_s5 + $0x78] sm:$0xff] }
 0x1b9   :  { %v530_v11 = vpop.f32.mrf.mxu1 }
 0x1ba   :  { %v531_v33 = vadd.f32 %v530_v11, %v4412_v50  ;;  %v946_v50 = vld [vmem:[%s5647_s3] sm:$0x3]  ;;  %v673_v53 = vadd.f32 %v651_v3, %v527_v36 }
 0x1bb   :  { %v661_v12 = vpop.f32.mrf.mxu0  ;;  %v532_v13 = vpop.f32.mrf.mxu1  ;;  %v955_v6 = vrot.slane %v946_v50, %v954_v47  ;;  %v985_v47 = vld [vmem:[%s5648_s4 + $0x18] sm:$0xff] }
 0x1bc   :  { %v533_v31 = vadd.f32 %v532_v13, %v4418_v52  ;;  %v674_v49 = vadd.f32 %v655_v7, %v531_v33 }
 0x1bd   :  { %v663_v14 = vpop.f32.mrf.mxu0 }
 0x1be   :  { %v536_v15 = vpop.f32.mrf.mxu1  ;;  %v675_v43 = vadd.f32 %v657_v10, %v533_v31 }
 0x1bf   :  { %v537_v29 = vadd.f32 %v536_v15, %v435_v55 }
 0x1c0   :  { %v538_v19 = vpop.f32.mrf.mxu1 }
 0x1c1   :  { %v667_v16 = vpop.f32.mrf.mxu0  ;;  %v539_v32 = vadd.f32 %v538_v19, %v437_v58  ;;  %v676_v40 = vadd.f32 %v661_v12, %v537_v29 }
 0x1c3   :  { %v669_v18 = vpop.f32.mrf.mxu0  ;;  %v677_v44 = vadd.f32 %v663_v14, %v539_v32 }
 0x1c4   :  { %v542_v20 = vpop.f32.mrf.mxu1 }
 0x1c5   :  { %v543_v37 = vadd.f32 %v542_v20, %v441_v62 }
 0x1c6   :  { %v544_v23 = vpop.f32.mrf.mxu1 }
 0x1c7   :  { %v545_v42 = vadd.f32 %v544_v23, %v443_v2  ;;  %v678_v55 = vadd.f32 %v667_v16, %v543_v37  ;;  %v951_v2 = vrot.slane %v946_v50, %v950_v45  ;;  %v982_v37 = vld [vmem:[%s5648_s4] sm:$0xff]  ;;  %v1158_v45 = vld [vmem:[%s5649_s5 + $0x50] sm:$0xff]  ;;  %v1155_v50 = vld [vmem:[%s5649_s5 + $0x38] sm:$0xff] }
 0x1c9   :  { %v679_v0 = vadd.f32 %v669_v18, %v545_v42  ;;  %v1160_v42 = vld [vmem:[%s5649_s5 + $0x60] sm:$0xff] }
 0x1cb   :  { %v915_v21 = vpop.f32.mrf.mxu0 }
 0x1cd   :  { %v917_v22 = vpop.f32.mrf.mxu0 }
 0x1cf   :  { %v921_v24 = vpop.f32.mrf.mxu0 }
 0x1d1   :  { %v782_v25 = vpop.f32.mrf.mxu1  ;;  %v923_v26 = vpop.f32.mrf.mxu0 }
 0x1d2   :  { %v805_v1 = vadd.f32 %v782_v25, %v672_v46  ;;  %v988_v46 = vld [vmem:[%s5648_s4 + $0x30] sm:$0xff] }
 0x1d3   :  { %v784_v28 = vpop.f32.mrf.mxu1  ;;  %v927_v17 = vpop.f32.mrf.mxu0 }
 0x1d4   :  { %v806_v59 = vadd.f32 %v784_v28, %v673_v53  ;;  %v938_v14 = vadd.f32 %v915_v21, %v805_v1  ;;  %v1154_v53 = vld [vmem:[%s5649_s5 + $0x30] sm:$0xff] }
 0x1d5   :  { %v788_v30 = vpop.f32.mrf.mxu1  ;;  %v929_v39 = vpop.f32.mrf.mxu0  ;;  %v1170_v1 = vld [vmem:[%s5649_s5 + $0xb0] sm:$0xff] }
 0x1d6   :  { %v807_v56 = vadd.f32 %v788_v30, %v674_v49  ;;  %v939_v11 = vadd.f32 %v917_v22, %v806_v59  ;;  %v958_v28 = vadd.f32 %v951_v2, %v938_v14  ;;  %v1157_v49 = vld [vmem:[%s5649_s5 + $0x48] sm:$0xff] }
 0x1d7   :  { %v790_v35 = vpop.f32.mrf.mxu1  ;;  %v933_v57 = vpop.f32.mrf.mxu0  ;;  %v1149_v59 = vld [vmem:[%s5649_s5 + $0x8] sm:$0xff] }
 0x1d8   :  { %v808_v48 = vadd.f32 %v790_v35, %v675_v43  ;;  %v940_v9 = vadd.f32 %v921_v24, %v807_v56  ;;  %v959_v23 = vadd.f32 %v955_v6, %v939_v11  ;;  %v966_v32 = vmul.f32 0.01, %v958_v28  ;;  %v984_v43 = vld [vmem:[%s5648_s4 + $0x10] sm:$0xff]  ;;  %v1151_v56 = vld [vmem:[%s5649_s5 + $0x18] sm:$0xff] }
 0x1d9   :  { %v794_v41 = vpop.f32.mrf.mxu1  ;;  %v935_v10 = vpop.f32.mrf.mxu0  ;;  %v1191_v11 = vld [vmem:[%s5649_s5 + $0x158] sm:$0xff] }
 0x1da   :  { %v809_v51 = vadd.f32 %v794_v41, %v676_v40  ;;  %v941_v7 = vadd.f32 %v923_v26, %v808_v48  ;;  %v960_v20 = vadd.f32 %v951_v2, %v940_v9  ;;  %v967_v31 = vmul.f32 0.01, %v959_v23  ;;  %v983_v40 = vld [vmem:[%s5648_s4 + $0x8] sm:$0xff]  ;;  %v1192_v9 = vld [vmem:[%s5649_s5 + $0x160] sm:$0xff] }
 0x1db   :  { %v796_v52 = vpop.f32.mrf.mxu1  ;;  %v974_v36 = vmax.f32 %v958_v28, %v966_v32  ;;  %v1161_v41 = vld [vmem:[%s5649_s5 + $0x68] sm:$0xff]  ;;  %v1370_v32 = vld [vmem:[%s5649_s5 + $0x1e0] sm:$0xff] }
 0x1dc   :  { %v810_v54 = vadd.f32 %v796_v52, %v677_v44  ;;  %v942_v4 = vadd.f32 %v927_v17, %v809_v51  ;;  %v961_v16 = vadd.f32 %v955_v6, %v941_v7  ;;  %v968_v30 = vmul.f32 0.01, %v960_v20  ;;  %v1159_v44 = vld [vmem:[%s5649_s5 + $0x58] sm:$0xff]  ;;  %v1156_v51 = vld [vmem:[%s5649_s5 + $0x40] sm:$0xff]  ;;  %v987_v48 = vld [vmem:[%s5648_s4 + $0x28] sm:$0xff] }
 0x1dd   :  { %v800_v58 = vpop.f32.mrf.mxu1  ;;  %v975_v35 = vmax.f32 %v959_v23, %v967_v31  ;;  %v986_v52 = vld [vmem:[%s5648_s4 + $0x20] sm:$0xff]  ;;  %v1166_v7 = vld [vmem:[%s5649_s5 + $0x90] sm:$0xff]  ;;  %v1478_v23 = vld [vmem:[%s5649_s5 + $0x2a8] sm:$0xff] }
 0x1de   :  { %v943_v61 = vadd.f32 %v929_v39, %v810_v54  ;;  %v811_v62 = vadd.f32 %v800_v58, %v678_v55  ;;  %v962_v15 = vadd.f32 %v951_v2, %v942_v4  ;;  %v969_v17 = vmul.f32 0.01, %v961_v16  ;;  %v1162_v39 = vld [vmem:[%s5649_s5 + $0x70] sm:$0xff]  ;;  %v1153_v54 = vld [vmem:[%s5649_s5 + $0x28] sm:$0xff]  ;;  %v1152_v55 = vld [vmem:[%s5649_s5 + $0x20] sm:$0xff] }
 0x1df   :  { %v802_v5 = vpop.f32.mrf.mxu1  ;;  %v976_v34 = vmax.f32 %v960_v20, %v968_v30  ;;  %v989_v58 = vld [vmem:[%s5648_s4 + $0x38] sm:$0xff]  ;;  %v1169_v4 = vld [vmem:[%s5649_s5 + $0xa8] sm:$0xff]  ;;  %v1479_v20 = vld [vmem:[%s5649_s5 + $0x2b0] sm:$0xff] }
 0x1e0   :  { %v944_v8 = vadd.f32 %v933_v57, %v811_v62  ;;  %v812_v3 = vadd.f32 %v802_v5, %v679_v0  ;;  %v963_v12 = vadd.f32 %v955_v6, %v943_v61  ;;  %v970_v29 = vmul.f32 0.01, %v962_v15  ;;  %v1150_v57 = vld [vmem:[%s5649_s5 + $0x10] sm:$0xff]  ;;  %v1148_v61 = vld [vmem:[%s5649_s5] sm:$0xff]  ;;  %v1171_v0 = vld [vmem:[%s5649_s5 + $0xb8] sm:$0xff] }
 0x1e1   :  { %v977_v21 = vmax.f32 %v961_v16, %v969_v17  ;;  %v990_v62 = vld [vmem:[%s5648_s4 + $0x40] sm:$0xff]  ;;  %v1480_v16 = vld [vmem:[%s5649_s5 + $0x2b8] sm:$0xff]  ;;  %v1372_v30 = vld [vmem:[%s5649_s5 + $0x1f0] sm:$0xff] }
 0x1e2   :  { %v964_v63 = vadd.f32 %v951_v2, %v944_v8  ;;  %v945_v13 = vadd.f32 %v935_v10, %v812_v3  ;;  %v971_v27 = vmul.f32 0.01, %v963_v12  ;;  %v978_v33 = vmax.f32 %v962_v15, %v970_v29  ;;  %v991_v2 = vld [vmem:[%s5648_s4 + $0x48] sm:$0xff]  ;;  %v1168_v5 = vld [vmem:[%s5649_s5 + $0xa0] sm:$0xff]  ;;  %v1373_v29 = vld [vmem:[%s5649_s5 + $0x1f8] sm:$0xff] }
 0x1e3   :  { %v1193_v8 = vld [vmem:[%s5649_s5 + $0x168] sm:$0xff]  ;;  %v1164_v10 = vld [vmem:[%s5649_s5 + $0x80] sm:$0xff]  ;;  %v1475_v31 = vld [vmem:[%s5649_s5 + $0x290] sm:$0xff] }
 0x1e4   :  { %v965_v19 = vadd.f32 %v955_v6, %v945_v13  ;;  %v972_v18 = vmul.f32 0.01, %v964_v63  ;;  %v979_v22 = vmax.f32 %v963_v12, %v971_v27  ;;  %v1167_v6 = vld [vmem:[%s5649_s5 + $0x98] sm:$0xff]  ;;  %v1165_v3 = vld [vmem:[%s5649_s5 + $0x88] sm:$0xff]  ;;  %1255 = vmatpush2.msra.mxu0 %v1193_v8  ;;  %v1190_v12 = vld [vmem:[%s5649_s5 + $0x150] sm:$0xff] }
 0x1e5   :  { %1256 = vmatprep.subr.mxu0 %v3788_v60  ;;  %v1188_v13 = vld [vmem:[%s5649_s5 + $0x140] sm:$0xff] }
 0x1e6   :  { %v973_v25 = vmul.f32 0.01, %v965_v19  ;;  %v980_v24 = vmax.f32 %v964_v63, %v972_v18  ;;  %1257 = vmatpush2.msra.mxu0 %v1192_v9  ;;  %v1189_v63 = vld [vmem:[%s5649_s5 + $0x148] sm:$0xff]  ;;  %v1477_v27 = vld [vmem:[%s5649_s5 + $0x2a0] sm:$0xff]  ;;  %v1377_v9 = vld [vmem:[%s5649_s5 + $0x218] sm:$0xff] }
 0x1e7   :  { %1258 = vmatprep.subr.mxu0 %v3788_v60  ;;  %v1378_v8 = vld [vmem:[%s5649_s5 + $0x220] sm:$0xff] }
 0x1e8   :  { %v981_v26 = vmax.f32 %v965_v19, %v973_v25  ;;  %1259 = vmatpush2.msra.mxu0 %v1191_v11  ;;  %v1481_v11 = vld [vmem:[%s5649_s5 + $0x2c0] sm:$0xff] }
 0x1e9   :  { %1260 = vmatprep.subr.mxu0 %v3788_v60 }
 0x1ea   :  { %1047 = vmatprep.subr.mxu1 %v981_v26  ;;  %1261 = vmatpush2.msra.mxu0 %v1190_v12  ;;  %v1476_v26 = vld [vmem:[%s5649_s5 + $0x298] sm:$0xff]  ;;  %v1376_v12 = vld [vmem:[%s5649_s5 + $0x210] sm:$0xff] }
 0x1eb   :  { %1048 = vmatpush1.msra.mxu1 %v980_v24  ;;  %1262 = vmatprep.subr.mxu0 %v3788_v60 }
 0x1ec   :  { %1049 = vmatprep.subr.mxu1 %v979_v22  ;;  %1263 = vmatpush2.msra.mxu0 %v1189_v63  ;;  %v1371_v22 = vld [vmem:[%s5649_s5 + $0x1e8] sm:$0xff] }
 0x1ed   :  { %1050 = vmatpush1.msra.mxu1 %v978_v33  ;;  %1264 = vmatprep.subr.mxu0 %v3788_v60  ;;  %v1474_v33 = vld [vmem:[%s5649_s5 + $0x288] sm:$0xff] }
 0x1ee   :  { %1051 = vmatprep.subr.mxu1 %v977_v21  ;;  %1265 = vmatpush2.msra.mxu0 %v1188_v13  ;;  %v1369_v21 = vld [vmem:[%s5649_s5 + $0x1d8] sm:$0xff]  ;;  %v1375_v63 = vld [vmem:[%s5649_s5 + $0x208] sm:$0xff] }
 0x1ef   :  { %1052 = vmatpush1.msra.mxu1 %v976_v34  ;;  %1388 = vmatprep.subr.mxu0 %v3788_v60  ;;  %v1473_v34 = vld [vmem:[%s5649_s5 + $0x280] sm:$0xff] }
 0x1f0   :  { %1053 = vmatprep.subr.mxu1 %v975_v35  ;;  %v1368_v35 = vld [vmem:[%s5649_s5 + $0x1d0] sm:$0xff] }
 0x1f1   :  { %1054 = vmatpush1.msra.mxu1 %v974_v36  ;;  %v1472_v36 = vld [vmem:[%s5649_s5 + $0x278] sm:$0xff] }
 0x1f2   :  { %3082 = vmatmul.mubr.msk.f32.vlgmr.msra.gmra.mxu1 %vm992_vm2, %v982_v37  ;;  %1283 = vmatprep.subr.mxu1 %v3788_v60  ;;  %v1367_v37 = vld [vmem:[%s5649_s5 + $0x1c8] sm:$0xff] }
 0x1f3   :  { %1093 = vmatprep.mubr.f32.mxu1 %v3788_v60  ;;  %1284 = vmatpush1.msra.mxu1 %v1163_v38  ;;  %v1471_v38 = vld [vmem:[%s5649_s5 + $0x270] sm:$0xff] }
 0x1f4   :  { %1285 = vmatprep.subr.mxu1 %v3788_v60 }
 0x1f5   :  { %1286 = vmatpush1.msra.mxu1 %v1162_v39  ;;  %v1366_v39 = vld [vmem:[%s5649_s5 + $0x1c0] sm:$0xff] }
 0x1f6   :  { %3083 = vmatmul.mubr.msk.f32.gmra.mxu1 %vm992_vm2, %v983_v40  ;;  %1287 = vmatprep.subr.mxu1 %v3788_v60  ;;  %v1470_v40 = vld [vmem:[%s5649_s5 + $0x268] sm:$0xff] }
 0x1f7   :  { %1099 = vmatprep.mubr.f32.mxu1 %v3788_v60  ;;  %1288 = vmatpush1.msra.mxu1 %v1161_v41  ;;  %v1365_v41 = vld [vmem:[%s5649_s5 + $0x1b8] sm:$0xff] }
 0x1f8   :  { %1289 = vmatprep.subr.mxu1 %v3788_v60 }
 0x1f9   :  { %1290 = vmatpush1.msra.mxu1 %v1160_v42  ;;  %v1469_v42 = vld [vmem:[%s5649_s5 + $0x260] sm:$0xff] }
 0x1fa   :  { %3084 = vmatmul.mubr.msk.f32.gmra.mxu1 %vm992_vm2, %v984_v43  ;;  %1291 = vmatprep.subr.mxu1 %v3788_v60 }
 0x1fb   :  { %1105 = vmatprep.mubr.f32.mxu1 %v3788_v60  ;;  %1292 = vmatpush1.msra.mxu1 %v1159_v44  ;;  %v1364_v44 = vld [vmem:[%s5649_s5 + $0x1b0] sm:$0xff] }
 0x1fc   :  { %1293 = vmatprep.subr.mxu1 %v3788_v60 }
 0x1fd   :  { %1294 = vmatpush1.msra.mxu1 %v1158_v45  ;;  %v1468_v45 = vld [vmem:[%s5649_s5 + $0x258] sm:$0xff] }
 0x1fe   :  { %3085 = vmatmul.mubr.msk.f32.gmra.mxu1 %vm992_vm2, %v985_v47  ;;  %1295 = vmatprep.subr.mxu1 %v3788_v60  ;;  %v1363_v47 = vld [vmem:[%s5649_s5 + $0x1a8] sm:$0xff] }
 0x1ff   :  { %1111 = vmatprep.mubr.f32.mxu1 %v3788_v60  ;;  %1296 = vmatpush1.msra.mxu1 %v1157_v49  ;;  %v1467_v49 = vld [vmem:[%s5649_s5 + $0x250] sm:$0xff] }
 0x200   :  { %1297 = vmatprep.subr.mxu1 %v3788_v60 }
 0x201   :  { %1298 = vmatpush1.msra.mxu1 %v1156_v51 }
 0x202   :  { %3086 = vmatmul.mubr.msk.f32.gmra.mxu1 %vm992_vm2, %v986_v52  ;;  %1299 = vmatprep.subr.mxu1 %v3788_v60  ;;  %v1362_v52 = vld [vmem:[%s5649_s5 + $0x1a0] sm:$0xff] }
 0x203   :  { %1117 = vmatprep.mubr.f32.mxu1 %v3788_v60  ;;  %1300 = vmatpush1.msra.mxu1 %v1155_v50  ;;  %v1466_v50 = vld [vmem:[%s5649_s5 + $0x248] sm:$0xff] }
 0x204   :  { %1301 = vmatprep.subr.mxu1 %v3788_v60 }
 0x205   :  { %1302 = vmatpush1.msra.mxu1 %v1154_v53  ;;  %v1361_v53 = vld [vmem:[%s5649_s5 + $0x198] sm:$0xff] }
 0x206   :  { %3087 = vmatmul.mubr.msk.f32.gmra.mxu1 %vm992_vm2, %v987_v48  ;;  %1303 = vmatprep.subr.mxu1 %v3788_v60  ;;  %v1465_v48 = vld [vmem:[%s5649_s5 + $0x240] sm:$0xff] }
 0x207   :  { %1123 = vmatprep.mubr.f32.mxu1 %v3788_v60  ;;  %1304 = vmatpush1.msra.mxu1 %v1153_v54 }
 0x208   :  { %1305 = vmatprep.subr.mxu1 %v3788_v60 }
 0x209   :  { %1306 = vmatpush1.msra.mxu1 %v1152_v55  ;;  %v1360_v55 = vld [vmem:[%s5649_s5 + $0x190] sm:$0xff] }
 0x20a   :  { %3088 = vmatmul.mubr.msk.f32.gmra.mxu1 %vm992_vm2, %v988_v46  ;;  %1307 = vmatprep.subr.mxu1 %v3788_v60  ;;  %v1488_v46 = vld [vmem:[%s5649_s5 + $0x2f8] sm:$0xff] }
 0x20b   :  { %1129 = vmatprep.mubr.f32.mxu1 %v3788_v60  ;;  %1308 = vmatpush1.msra.mxu1 %v1151_v56  ;;  %v1359_v56 = vld [vmem:[%s5649_s5 + $0x188] sm:$0xff] }
 0x20c   :  { %1309 = vmatprep.subr.mxu1 %v3788_v60 }
 0x20d   :  { %1310 = vmatpush1.msra.mxu1 %v1150_v57  ;;  %v1487_v57 = vld [vmem:[%s5649_s5 + $0x2f0] sm:$0xff] }
 0x20e   :  { %3089 = vmatmul.mubr.msk.f32.gmra.mxu1 %vm992_vm2, %v989_v58  ;;  %1311 = vmatprep.subr.mxu1 %v3788_v60 }
 0x20f   :  { %1135 = vmatprep.mubr.f32.mxu1 %v3788_v60  ;;  %1312 = vmatpush1.msra.mxu1 %v1149_v59  ;;  %v1358_v59 = vld [vmem:[%s5649_s5 + $0x180] sm:$0xff] }
 0x210   :  { %1313 = vmatprep.subr.mxu1 %v3788_v60 }
 0x211   :  { %1314 = vmatpush1.msra.mxu1 %v1148_v61  ;;  %v1486_v61 = vld [vmem:[%s5649_s5 + $0x2e8] sm:$0xff] }
 0x212   :  { %3090 = vmatmul.mubr.msk.f32.gmra.mxu1 %vm992_vm2, %v990_v62  ;;  %1331 = vmatprep.subr.mxu1 %v3788_v60  ;;  %v1381_v62 = vld [vmem:[%s5649_s5 + $0x238] sm:$0xff] }
 0x213   :  { %1141 = vmatprep.mubr.f32.mxu1 %v3788_v60  ;;  %1332 = vmatpush2.msra.mxu1 %v1171_v0  ;;  %v1485_v0 = vld [vmem:[%s5649_s5 + $0x2e0] sm:$0xff] }
 0x214   :  { %1333 = vmatprep.subr.mxu1 %v3788_v60 }
 0x215   :  { %1334 = vmatpush2.msra.mxu1 %v1170_v1 }
 0x216   :  { %3091 = vmatmul.mubr.msk.f32.gmra.mxu1 %vm992_vm2, %v991_v2  ;;  %1335 = vmatprep.subr.mxu1 %v3788_v60  ;;  %v1380_v2 = vld [vmem:[%s5649_s5 + $0x230] sm:$0xff] }
 0x217   :  { %1336 = vmatpush2.msra.mxu1 %v1169_v4  ;;  %v1484_v4 = vld [vmem:[%s5649_s5 + $0x2d8] sm:$0xff] }
 0x218   :  { %1337 = vmatprep.subr.mxu1 %v3788_v60 }
 0x219   :  { %1338 = vmatpush2.msra.mxu1 %v1168_v5  ;;  %v1379_v5 = vld [vmem:[%s5649_s5 + $0x228] sm:$0xff] }
 0x21a   :  { %1339 = vmatprep.subr.mxu1 %v3788_v60 }
 0x21b   :  { %1340 = vmatpush2.msra.mxu1 %v1167_v6  ;;  %v1483_v6 = vld [vmem:[%s5649_s5 + $0x2d0] sm:$0xff] }
 0x21c   :  { %1341 = vmatprep.subr.mxu1 %v3788_v60 }
 0x21d   :  { %1342 = vmatpush2.msra.mxu1 %v1166_v7 }
 0x21e   :  { %1343 = vmatprep.subr.mxu1 %v3788_v60 }
 0x21f   :  { %1344 = vmatpush2.msra.mxu1 %v1165_v3  ;;  %v1482_v3 = vld [vmem:[%s5649_s5 + $0x2c8] sm:$0xff] }
 0x220   :  { %1345 = vmatprep.subr.mxu1 %v3788_v60 }
 0x221   :  { %1346 = vmatpush2.msra.mxu1 %v1164_v10 }
 0x222   :  { %1495 = vmatprep.subr.mxu1 %v3788_v60 }
 0x2b2   :  { %v1089_v14 = vpop.f32.mrf.mxu1 }
 0x2b4   :  { %v1091_v15 = vpop.f32.mrf.mxu1 }
 0x2b5   :  { %3094 = vmatprep.mubr.msk.f32.mxu1 %vm70_vm0, %v1091_v15  ;;  %v1587_v15 = vld [vmem:[%s5649_s5 + $0x378] sm:$0xff] }
 0x2b6   :  { %v1095_v19 = vpop.f32.mrf.mxu1  ;;  %1348 = vmatmul.mubr.f32.vlgmr.msra.gmra.mxu1 %v1089_v14  ;;  %v1374_v14 = vld [vmem:[%s5649_s5 + $0x200] sm:$0xff] }
 0x2b7   :  { %1496 = vmatpush1.msra.mxu1 %v1480_v16 }
 0x2b8   :  { %v1097_v18 = vpop.f32.mrf.mxu1  ;;  %1497 = vmatprep.subr.mxu1 %v3788_v60 }
 0x2b9   :  { %3095 = vmatprep.mubr.msk.f32.mxu1 %vm70_vm0, %v1097_v18  ;;  %1498 = vmatpush1.msra.mxu1 %v1479_v20  ;;  %v1585_v20 = vld [vmem:[%s5649_s5 + $0x368] sm:$0xff] }
 0x2ba   :  { %v1101_v25 = vpop.f32.mrf.mxu1  ;;  %1353 = vmatmul.mubr.f32.gmra.mxu1 %v1095_v19  ;;  %1499 = vmatprep.subr.mxu1 %v3788_v60  ;;  %v1586_v19 = vld [vmem:[%s5649_s5 + $0x370] sm:$0xff] }
 0x2bb   :  { %1500 = vmatpush1.msra.mxu1 %v1478_v23  ;;  %v1584_v23 = vld [vmem:[%s5649_s5 + $0x360] sm:$0xff] }
 0x2bc   :  { %v1103_v28 = vpop.f32.mrf.mxu1  ;;  %1501 = vmatprep.subr.mxu1 %v3788_v60 }
 0x2bd   :  { %3092 = vmatprep.mubr.msk.f32.mxu0 %vm70_vm0, %v1103_v28  ;;  %1502 = vmatpush1.msra.mxu1 %v1477_v27  ;;  %v1582_v27 = vld [vmem:[%s5649_s5 + $0x350] sm:$0xff]  ;;  %v1581_v28 = vld [vmem:[%s5649_s5 + $0x348] sm:$0xff] }
 0x2be   :  { %v1107_v17 = vpop.f32.mrf.mxu1  ;;  %1267 = vmatmul.mubr.f32.vlgmr.msra.gmra.mxu0 %v1101_v25  ;;  %1503 = vmatprep.subr.mxu1 %v3788_v60  ;;  %v1583_v25 = vld [vmem:[%s5649_s5 + $0x358] sm:$0xff] }
 0x2bf   :  { %1389 = vmatpush1.msra.mxu0 %v1373_v29  ;;  %1504 = vmatpush1.msra.mxu1 %v1476_v26  ;;  %v1580_v29 = vld [vmem:[%s5649_s5 + $0x340] sm:$0xff]  ;;  %v1579_v26 = vld [vmem:[%s5649_s5 + $0x338] sm:$0xff] }
 0x2c0   :  { %1390 = vmatprep.subr.mxu0 %v3788_v60  ;;  %v1109_v24 = vpop.f32.mrf.mxu1  ;;  %1505 = vmatprep.subr.mxu1 %v3788_v60 }
 0x2c1   :  { %1391 = vmatpush1.msra.mxu0 %v1372_v30  ;;  %3093 = vmatprep.mubr.msk.f32.mxu0 %vm70_vm0, %v1109_v24  ;;  %v1577_v30 = vld [vmem:[%s5649_s5 + $0x328] sm:$0xff]  ;;  %v1576_v24 = vld [vmem:[%s5649_s5 + $0x320] sm:$0xff] }
 0x2c2   :  { %1392 = vmatprep.subr.mxu0 %v3788_v60  ;;  %1272 = vmatmul.mubr.f32.gmra.mxu0 %v1107_v17  ;;  %v4730_v43 = vpop.f32.mrf.mxu1  ;;  %v1578_v17 = vld [vmem:[%s5649_s5 + $0x330] sm:$0xff] }
 0x2c3   :  { %1393 = vmatpush1.msra.mxu0 %v1371_v22  ;;  %1506 = vmatpush1.msra.mxu1 %v1475_v31  ;;  %v1575_v22 = vld [vmem:[%s5649_s5 + $0x318] sm:$0xff]  ;;  %v1574_v31 = vld [vmem:[%s5649_s5 + $0x310] sm:$0xff] }
 0x2c4   :  { %1394 = vmatprep.subr.mxu0 %v3788_v60  ;;  %1507 = vmatprep.subr.mxu1 %v3788_v60  ;;  %v4748_v51 = vpop.f32.mrf.mxu1 }
 0x2c5   :  { %1395 = vmatpush1.msra.mxu0 %v1370_v32  ;;  %1508 = vmatpush1.msra.mxu1 %v1474_v33  ;;  %v1573_v32 = vld [vmem:[%s5649_s5 + $0x308] sm:$0xff]  ;;  %v1572_v33 = vld [vmem:[%s5649_s5 + $0x300] sm:$0xff] }
 0x2c6   :  { %1396 = vmatprep.subr.mxu0 %v3788_v60  ;;  %1509 = vmatprep.subr.mxu1 %v3788_v60  ;;  %v4766_v54 = vpop.f32.mrf.mxu1 }
 0x2c7   :  { %1397 = vmatpush1.msra.mxu0 %v1369_v21  ;;  %1510 = vmatpush1.msra.mxu1 %v1473_v34  ;;  %v1595_v21 = vld [vmem:[%s5649_s5 + $0x3b8] sm:$0xff]  ;;  %v1594_v34 = vld [vmem:[%s5649_s5 + $0x3b0] sm:$0xff] }
 0x2c8   :  { %1398 = vmatprep.subr.mxu0 %v3788_v60  ;;  %1511 = vmatprep.subr.mxu1 %v3788_v60  ;;  %v4784_v58 = vpop.f32.mrf.mxu1 }
 0x2c9   :  { %1399 = vmatpush1.msra.mxu0 %v1368_v35  ;;  %1512 = vmatpush1.msra.mxu1 %v1472_v36  ;;  %v1593_v35 = vld [vmem:[%s5649_s5 + $0x3a8] sm:$0xff]  ;;  %v1592_v36 = vld [vmem:[%s5649_s5 + $0x3a0] sm:$0xff] }
 0x2ca   :  { %1400 = vmatprep.subr.mxu0 %v3788_v60  ;;  %1513 = vmatprep.subr.mxu1 %v3788_v60  ;;  %v1125_v1 = vpop.f32.mrf.mxu1 }
 0x2cb   :  { %1401 = vmatpush1.msra.mxu0 %v1367_v37  ;;  %1514 = vmatpush1.msra.mxu1 %v1471_v38  ;;  %v1591_v37 = vld [vmem:[%s5649_s5 + $0x398] sm:$0xff]  ;;  %v1590_v38 = vld [vmem:[%s5649_s5 + $0x390] sm:$0xff] }
 0x2cc   :  { %1402 = vmatprep.subr.mxu0 %v3788_v60  ;;  %1515 = vmatprep.subr.mxu1 %v3788_v60  ;;  %v1127_v7 = vpop.f32.mrf.mxu1 }
 0x2cd   :  { %1403 = vmatpush1.msra.mxu0 %v1366_v39  ;;  %1516 = vmatpush1.msra.mxu1 %v1470_v40  ;;  %v1589_v39 = vld [vmem:[%s5649_s5 + $0x388] sm:$0xff] }
 0x2ce   :  { %1404 = vmatprep.subr.mxu0 %v3788_v60  ;;  %1517 = vmatprep.subr.mxu1 %v3788_v60  ;;  %v1131_v10 = vpop.f32.mrf.mxu1 }
 0x2cf   :  { %1405 = vmatpush1.msra.mxu0 %v1365_v41  ;;  %1518 = vmatpush1.msra.mxu1 %v1469_v42  ;;  %v1588_v41 = vld [vmem:[%s5649_s5 + $0x380] sm:$0xff] }
 0x2d0   :  { %1406 = vmatprep.subr.mxu0 %v3788_v60  ;;  %1519 = vmatprep.subr.mxu1 %v3788_v60  ;;  %v1133_v13 = vpop.f32.mrf.mxu1 }
 0x2d1   :  { %1407 = vmatpush1.msra.mxu0 %v1364_v44  ;;  %1520 = vmatpush1.msra.mxu1 %v1468_v45 }
 0x2d2   :  { %1408 = vmatprep.subr.mxu0 %v3788_v60  ;;  %1521 = vmatprep.subr.mxu1 %v3788_v60  ;;  %v4855_v16 = vpop.f32.mrf.mxu1 }
 0x2d3   :  { %1409 = vmatpush1.msra.mxu0 %v1363_v47  ;;  %1522 = vmatpush1.msra.mxu1 %v1467_v49 }
 0x2d4   :  { %1410 = vmatprep.subr.mxu0 %v3788_v60  ;;  %1523 = vmatprep.subr.mxu1 %v3788_v60  ;;  %v1139_v18 = vpop.f32.mrf.mxu1 }
 0x2d5   :  { %1411 = vmatpush1.msra.mxu0 %v1362_v52  ;;  %1524 = vmatpush1.msra.mxu1 %v1466_v50 }
 0x2d6   :  { %1412 = vmatprep.subr.mxu0 %v3788_v60  ;;  %1525 = vmatprep.subr.mxu1 %v3788_v60  ;;  %v1143_v40 = vpop.f32.mrf.mxu1 }
 0x2d7   :  { %1413 = vmatpush1.msra.mxu0 %v1361_v53  ;;  %1526 = vmatpush1.msra.mxu1 %v1465_v48 }
 0x2d8   :  { %1414 = vmatprep.subr.mxu0 %v3788_v60  ;;  %1543 = vmatprep.subr.mxu1 %v3788_v60  ;;  %v1145_v42 = vpop.f32.mrf.mxu1 }
 0x2d9   :  { %1415 = vmatpush1.msra.mxu0 %v1360_v55  ;;  %1544 = vmatpush2.msra.mxu1 %v1488_v46 }
 0x2da   :  { %1416 = vmatprep.subr.mxu0 %v3788_v60  ;;  %1545 = vmatprep.subr.mxu1 %v3788_v60 }
 0x2db   :  { %1417 = vmatpush1.msra.mxu0 %v1359_v56  ;;  %1546 = vmatpush2.msra.mxu1 %v1487_v57 }
 0x2dc   :  { %1418 = vmatprep.subr.mxu0 %v3788_v60  ;;  %1547 = vmatprep.subr.mxu1 %v3788_v60 }
 0x2dd   :  { %1419 = vmatpush1.msra.mxu0 %v1358_v59  ;;  %1548 = vmatpush2.msra.mxu1 %v1486_v61 }
 0x2de   :  { %1436 = vmatprep.subr.mxu0 %v3788_v60  ;;  %1549 = vmatprep.subr.mxu1 %v3788_v60 }
 0x2df   :  { %1437 = vmatpush2.msra.mxu0 %v1381_v62  ;;  %1550 = vmatpush2.msra.mxu1 %v1485_v0 }
 0x2e0   :  { %1438 = vmatprep.subr.mxu0 %v3788_v60  ;;  %1551 = vmatprep.subr.mxu1 %v3788_v60 }
 0x2e1   :  { %1439 = vmatpush2.msra.mxu0 %v1380_v2  ;;  %1552 = vmatpush2.msra.mxu1 %v1484_v4 }
 0x2e2   :  { %1440 = vmatprep.subr.mxu0 %v3788_v60  ;;  %1553 = vmatprep.subr.mxu1 %v3788_v60 }
 0x2e3   :  { %1441 = vmatpush2.msra.mxu0 %v1379_v5  ;;  %1554 = vmatpush2.msra.mxu1 %v1483_v6  ;;  %v3102_v6 = vld [vmem:[%s5650_s6] ss:$0 sm:$0xff] }
 0x2e4   :  { %1442 = vmatprep.subr.mxu0 %v3788_v60  ;;  %1555 = vmatprep.subr.mxu1 %v3788_v60 }
 0x2e5   :  { %1443 = vmatpush2.msra.mxu0 %v1378_v8  ;;  %3096 = vmatprep.mubr.msk.f32.mxu0 %vm70_vm0, %v4748_v51 }
 0x2e6   :  { %1444 = vmatprep.subr.mxu0 %v3788_v60  ;;  %1556 = vmatpush2.msra.mxu1 %v1482_v3 }
 0x2e7   :  { %1445 = vmatpush2.msra.mxu0 %v1377_v9  ;;  %1557 = vmatprep.subr.mxu1 %v3788_v60 }
 0x2e8   :  { %1446 = vmatprep.subr.mxu0 %v3788_v60  ;;  %1558 = vmatpush2.msra.mxu1 %v1481_v11 }
 0x2e9   :  { %1447 = vmatpush2.msra.mxu0 %v1376_v12  ;;  %3098 = vmatprep.mubr.msk.f32.mxu1 %vm70_vm0, %v1127_v7 }
 0x2ea   :  { %1448 = vmatprep.subr.mxu0 %v3788_v60  ;;  %1560 = vmatmul.mubr.f32.vlgmr.msra.gmra.mxu1 %v1125_v1 }
 0x2eb   :  { %1449 = vmatpush2.msra.mxu0 %v1375_v63  ;;  %3099 = vmatprep.mubr.msk.f32.mxu1 %vm70_vm0, %v1133_v13 }
 0x2ec   :  { %1450 = vmatprep.subr.mxu0 %v3788_v60 }
 0x2ed   :  { %1451 = vmatpush2.msra.mxu0 %v1374_v14 }
 0x2ee   :  { %1453 = vmatmul.mubr.f32.vlgmr.msra.gmra.mxu0 %v4730_v43  ;;  %1602 = vmatprep.subr.mxu0 %v3788_v60  ;;  %v1692_v43 = vld [vmem:[%s5651_s7] sm:$0xff] }
 0x2ef   :  { %1603 = vmatpush1.msra.mxu0 %v1587_v15  ;;  %3097 = vmatprep.mubr.msk.f32.mxu0 %vm70_vm0, %v4784_v58 }
 0x2f0   :  { %1604 = vmatprep.subr.mxu0 %v3788_v60  ;;  %1565 = vmatmul.mubr.f32.gmra.mxu1 %v1131_v10 }
 0x2f1   :  { %1605 = vmatpush1.msra.mxu0 %v1586_v19  ;;  %3397 = vmatprep.mubr.msk.f32.mxu1 %vm1702_vm3, %v1692_v43  ;;  %v1871_v19 = vld [vmem:[%s5652_s8 + $0xb8] sm:$0xff]  ;;  %v2040_v43 = vld [vmem:[%s5652_s8 + $0xf0] sm:$0xff] }
 0x2f2   :  { %1458 = vmatmul.mubr.f32.gmra.mxu0 %v4766_v54  ;;  %1606 = vmatprep.subr.mxu0 %v3788_v60 }
 0x2f3   :  { %1607 = vmatpush1.msra.mxu0 %v1585_v20  ;;  %3100 = vmatprep.mubr.msk.f32.mxu0 %vm70_vm0, %v1139_v18  ;;  %v1694_v20 = vld [vmem:[%s5651_s7 + $0x10] sm:$0xff] }
 0x2f4   :  { %1608 = vmatprep.subr.mxu0 %v3788_v60  ;;  %v1870_v18 = vld [vmem:[%s5652_s8 + $0xb0] sm:$0xff] }
 0x2f5   :  { %1609 = vmatpush1.msra.mxu0 %v1584_v23  ;;  %v1695_v23 = vld [vmem:[%s5651_s7 + $0x18] sm:$0xff] }
 0x2f6   :  { %1610 = vmatprep.subr.mxu0 %v3788_v60 }
 0x2f7   :  { %1611 = vmatpush1.msra.mxu0 %v1583_v25  ;;  %v1869_v25 = vld [vmem:[%s5652_s8 + $0xa8] sm:$0xff] }
 0x2f8   :  { %1612 = vmatprep.subr.mxu0 %v3788_v60 }
 0x2f9   :  { %1613 = vmatpush1.msra.mxu0 %v1582_v27  ;;  %v1696_v27 = vld [vmem:[%s5651_s7 + $0x20] sm:$0xff] }
 0x2fa   :  { %1614 = vmatprep.subr.mxu0 %v3788_v60 }
 0x2fb   :  { %1615 = vmatpush1.msra.mxu0 %v1581_v28  ;;  %v1868_v28 = vld [vmem:[%s5652_s8 + $0xa0] sm:$0xff] }
 0x2fc   :  { %1616 = vmatprep.subr.mxu0 %v3788_v60 }
 0x2fd   :  { %1617 = vmatpush1.msra.mxu0 %v1580_v29  ;;  %v1697_v29 = vld [vmem:[%s5651_s7 + $0x28] sm:$0xff] }
 0x2fe   :  { %1618 = vmatprep.subr.mxu0 %v3788_v60 }
 0x2ff   :  { %1619 = vmatpush1.msra.mxu0 %v1579_v26  ;;  %v1867_v26 = vld [vmem:[%s5652_s8 + $0x98] sm:$0xff] }
 0x300   :  { %1620 = vmatprep.subr.mxu0 %v3788_v60 }
 0x301   :  { %1621 = vmatpush1.msra.mxu0 %v1578_v17  ;;  %v1698_v17 = vld [vmem:[%s5651_s7 + $0x30] sm:$0xff] }
 0x302   :  { %1622 = vmatprep.subr.mxu0 %v3788_v60 }
 0x303   :  { %1623 = vmatpush1.msra.mxu0 %v1577_v30  ;;  %v1866_v30 = vld [vmem:[%s5652_s8 + $0x90] sm:$0xff] }
 0x304   :  { %1624 = vmatprep.subr.mxu0 %v3788_v60 }
 0x305   :  { %1625 = vmatpush1.msra.mxu0 %v1576_v24  ;;  %v1699_v24 = vld [vmem:[%s5651_s7 + $0x38] sm:$0xff] }
 0x306   :  { %1626 = vmatprep.subr.mxu0 %v3788_v60 }
 0x307   :  { %1627 = vmatpush1.msra.mxu0 %v1575_v22  ;;  %v1865_v22 = vld [vmem:[%s5652_s8 + $0x88] sm:$0xff] }
 0x308   :  { %1628 = vmatprep.subr.mxu0 %v3788_v60 }
 0x309   :  { %1629 = vmatpush1.msra.mxu0 %v1574_v31  ;;  %v1700_v31 = vld [vmem:[%s5651_s7 + $0x40] sm:$0xff] }
 0x30a   :  { %1630 = vmatprep.subr.mxu0 %v3788_v60 }
 0x30b   :  { %1631 = vmatpush1.msra.mxu0 %v1573_v32  ;;  %v1864_v32 = vld [vmem:[%s5652_s8 + $0x80] sm:$0xff] }
 0x30c   :  { %1632 = vmatprep.subr.mxu0 %v3788_v60 }
 0x30d   :  { %1633 = vmatpush1.msra.mxu0 %v1572_v33  ;;  %v1701_v33 = vld [vmem:[%s5651_s7 + $0x48] sm:$0xff] }
 0x30e   :  { %1650 = vmatprep.subr.mxu0 %v3788_v60 }
 0x30f   :  { %1651 = vmatpush2.msra.mxu0 %v1595_v21  ;;  %v1863_v21 = vld [vmem:[%s5652_s8 + $0x78] sm:$0xff] }
 0x310   :  { %1652 = vmatprep.subr.mxu0 %v3788_v60 }
 0x311   :  { %1653 = vmatpush2.msra.mxu0 %v1594_v34  ;;  %v1862_v34 = vld [vmem:[%s5652_s8 + $0x70] sm:$0xff] }
 0x312   :  { %1654 = vmatprep.subr.mxu0 %v3788_v60 }
 0x313   :  { %1655 = vmatpush2.msra.mxu0 %v1593_v35  ;;  %v1861_v35 = vld [vmem:[%s5652_s8 + $0x68] sm:$0xff] }
 0x314   :  { %1656 = vmatprep.subr.mxu0 %v3788_v60 }
 0x315   :  { %1657 = vmatpush2.msra.mxu0 %v1592_v36  ;;  %v1860_v36 = vld [vmem:[%s5652_s8 + $0x60] sm:$0xff] }
 0x316   :  { %1658 = vmatprep.subr.mxu0 %v3788_v60 }
 0x317   :  { %1659 = vmatpush2.msra.mxu0 %v1591_v37  ;;  %v2045_v37 = vld [vmem:[%s5652_s8 + $0x118] sm:$0xff] }
 0x318   :  { %1660 = vmatprep.subr.mxu0 %v3788_v60 }
 0x319   :  { %1661 = vmatpush2.msra.mxu0 %v1590_v38  ;;  %v1859_v38 = vld [vmem:[%s5652_s8 + $0x58] sm:$0xff] }
 0x31a   :  { %1662 = vmatprep.subr.mxu0 %v3788_v60 }
 0x31b   :  { %1663 = vmatpush2.msra.mxu0 %v1589_v39  ;;  %v2044_v39 = vld [vmem:[%s5652_s8 + $0x110] sm:$0xff] }
 0x31c   :  { %1664 = vmatprep.subr.mxu0 %v3788_v60 }
 0x31d   :  { %1665 = vmatpush2.msra.mxu0 %v1588_v41  ;;  %v2042_v41 = vld [vmem:[%s5652_s8 + $0x100] sm:$0xff] }
 0x31e   :  { %1667 = vmatmul.mubr.f32.vlgmr.msra.gmra.mxu0 %v4855_v16  ;;  %v1693_v16 = vld [vmem:[%s5651_s7 + $0x8] sm:$0xff]  ;;  %3466 = vmatprep.subr.mxu0 %v2045_v37 }
 0x31f   :  { %3101 = vmatprep.mubr.msk.f32.mxu0 %vm70_vm0, %v1145_v42  ;;  %3467 = vmatpush3.msra.mxu0 %v2045_v37  ;;  %v2041_v42 = vld [vmem:[%s5652_s8 + $0xf8] sm:$0xff]  ;;  %v2353_v37 = vld [vmem:[%s5654_s10 + $0xa8] sm:$0xff] }
 0x320   :  { %3468 = vmatprep.subr.mxu0 %v2044_v39 }
 0x321   :  { %3469 = vmatpush3.msra.mxu0 %v2044_v39  ;;  %v2352_v39 = vld [vmem:[%s5654_s10 + $0xa0] sm:$0xff] }
 0x322   :  { %1672 = vmatmul.mubr.f32.gmra.mxu0 %v1143_v40  ;;  %v2043_v40 = vld [vmem:[%s5652_s8 + $0x108] sm:$0xff] }
 0x323   :  { %3470 = vmatprep.subr.mxu0 %v2043_v40 }
 0x324   :  { %3471 = vmatpush3.msra.mxu0 %v2043_v40  ;;  %v2339_v40 = vld [vmem:[%s5654_s10 + $0x38] sm:$0xff] }
 0x325   :  { %3472 = vmatprep.subr.mxu0 %v2042_v41 }
 0x326   :  { %3473 = vmatpush3.msra.mxu0 %v2042_v41  ;;  %v2351_v41 = vld [vmem:[%s5654_s10 + $0x98] sm:$0xff] }
 0x327   :  { %3474 = vmatprep.subr.mxu0 %v2041_v42 }
 0x328   :  { %3475 = vmatpush3.msra.mxu0 %v2041_v42  ;;  %v2338_v42 = vld [vmem:[%s5654_s10 + $0x30] sm:$0xff] }
 0x329   :  { %3476 = vmatprep.subr.mxu0 %v2040_v43 }
 0x32a   :  { %3477 = vmatpush3.msra.mxu0 %v2040_v43  ;;  %v2350_v43 = vld [vmem:[%s5654_s10 + $0x90] sm:$0xff] }
 0x376   :  { %v1349_v44 = vpop.f32.mrf.mxu1 }
 0x378   :  { %v1351_v45 = vpop.f32.mrf.mxu1 }
 0x379   :  { %v2038_v45 = vld [vmem:[%s5652_s8 + $0xe0] sm:$0xff] }
 0x37a   :  { %v1354_v47 = vpop.f32.mrf.mxu1 }
 0x37c   :  { %v1356_v49 = vpop.f32.mrf.mxu1 }
 0x37d   :  { %v2036_v49 = vld [vmem:[%s5652_s8 + $0xd0] sm:$0xff] }
 0x37e   :  { %v1268_v51 = vpop.f32.mrf.mxu0 }
 0x37f   :  { %v1350_v52 = vadd.f32 %v1349_v44, %v1268_v51  ;;  %v2039_v44 = vld [vmem:[%s5652_s8 + $0xe8] sm:$0xff] }
 0x380   :  { %v1270_v50 = vpop.f32.mrf.mxu0  ;;  %3478 = vmatprep.subr.mxu0 %v2039_v44  ;;  %v2035_v51 = vld [vmem:[%s5652_s8 + $0xc8] sm:$0xff] }
 0x381   :  { %3479 = vmatpush3.msra.mxu0 %v2039_v44  ;;  %v2235_v50 = vld [vmem:[%s5652_s8 + $0x1d8] sm:$0xff]  ;;  %v2337_v44 = vld [vmem:[%s5654_s10 + $0x28] sm:$0xff] }
 0x382   :  { %v1273_v53 = vpop.f32.mrf.mxu0  ;;  %3480 = vmatprep.subr.mxu0 %v2038_v45 }
 0x383   :  { %v1355_v48 = vadd.f32 %v1354_v47, %v1273_v53  ;;  %3481 = vmatpush3.msra.mxu0 %v2038_v45  ;;  %v2037_v47 = vld [vmem:[%s5652_s8 + $0xd8] sm:$0xff]  ;;  %v2349_v45 = vld [vmem:[%s5654_s10 + $0x88] sm:$0xff] }
 0x384   :  { %v1275_v54 = vpop.f32.mrf.mxu0  ;;  %3482 = vmatprep.subr.mxu0 %v2037_v47 }
 0x385   :  { %3483 = vmatpush3.msra.mxu0 %v2037_v47  ;;  %v2336_v47 = vld [vmem:[%s5654_s10 + $0x20] sm:$0xff] }
 0x386   :  { %3484 = vmatprep.subr.mxu0 %v2036_v49 }
 0x387   :  { %3485 = vmatpush3.msra.mxu0 %v2036_v49  ;;  %v2348_v49 = vld [vmem:[%s5654_s10 + $0x80] sm:$0xff] }
 0x388   :  { %3486 = vmatprep.subr.mxu0 %v2035_v51 }
 0x389   :  { %3487 = vmatpush3.msra.mxu0 %v2035_v51  ;;  %v2335_v51 = vld [vmem:[%s5654_s10 + $0x18] sm:$0xff] }
 0x3aa   :  { %v1561_v55 = vpop.f32.mrf.mxu1 }
 0x3ac   :  { %v1563_v46 = vpop.f32.mrf.mxu1 }
 0x3ad   :  { %v1858_v46 = vld [vmem:[%s5652_s8 + $0x50] sm:$0xff] }
 0x3ae   :  { %v1454_v56 = vpop.f32.mrf.mxu0 }
 0x3af   :  { %v1463_v0 = vadd.f32 %v1454_v56, %v1350_v52  ;;  %v2034_v52 = vld [vmem:[%s5652_s8 + $0xc0] sm:$0xff] }
 0x3b0   :  { %v1456_v57 = vpop.f32.mrf.mxu0  ;;  %v1566_v58 = vpop.f32.mrf.mxu1  ;;  %3488 = vmatprep.subr.mxu0 %v2034_v52 }
 0x3b1   :  { %v1570_v1 = vadd.f32 %v1561_v55, %v1463_v0  ;;  %3489 = vmatpush3.msra.mxu0 %v2034_v52  ;;  %v1857_v57 = vld [vmem:[%s5652_s8 + $0x48] sm:$0xff]  ;;  %v2347_v52 = vld [vmem:[%s5654_s10 + $0x78] sm:$0xff] }
 0x3b2   :  { %v1459_v59 = vpop.f32.mrf.mxu0  ;;  %v1568_v61 = vpop.f32.mrf.mxu1  ;;  %3520 = vmatprep.subr.mxu0 %v2235_v50  ;;  %v2233_v0 = vld [vmem:[%s5652_s8 + $0x1c8] sm:$0xff] }
 0x3b3   :  { %v1464_v2 = vadd.f32 %v1459_v59, %v1355_v48  ;;  %v1856_v59 = vld [vmem:[%s5652_s8 + $0x40] sm:$0xff]  ;;  %v2234_v61 = vld [vmem:[%s5652_s8 + $0x1d0] sm:$0xff] }
 0x3b4   :  { %v1461_v62 = vpop.f32.mrf.mxu0 }
 0x3b5   :  { %v1571_v8 = vadd.f32 %v1566_v58, %v1464_v2  ;;  %v1855_v62 = vld [vmem:[%s5652_s8 + $0x38] sm:$0xff]  ;;  %v2232_v2 = vld [vmem:[%s5652_s8 + $0x1c0] sm:$0xff] }
 0x3de   :  { %v1668_v4 = vpop.f32.mrf.mxu0 }
 0x3df   :  { %v1677_v5 = vadd.f32 %v1668_v4, %v1570_v1  ;;  %v1854_v1 = vld [vmem:[%s5652_s8 + $0x30] sm:$0xff]  ;;  %v1853_v4 = vld [vmem:[%s5652_s8 + $0x28] sm:$0xff] }
 0x3e0   :  { %v1670_v7 = vpop.f32.mrf.mxu0 }
 0x3e1   :  { %v1686_v9 = vadd.f32 %v3102_v6, %v1677_v5  ;;  %v2231_v5 = vld [vmem:[%s5652_s8 + $0x1b8] sm:$0xff]  ;;  %v2230_v7 = vld [vmem:[%s5652_s8 + $0x1b0] sm:$0xff] }
 0x3e2   :  { %v1673_v3 = vpop.f32.mrf.mxu0 }
 0x3e3   :  { %v1678_v10 = vadd.f32 %v1673_v3, %v1571_v8  ;;  %v1688_v63 = vmul.f32 0.01, %v1686_v9  ;;  %v1851_v8 = vld [vmem:[%s5652_s8 + $0x18] sm:$0xff]  ;;  %v2229_v3 = vld [vmem:[%s5652_s8 + $0x1a8] sm:$0xff] }
 0x3e4   :  { %v1675_v11 = vpop.f32.mrf.mxu0 }
 0x3e5   :  { %v1687_v12 = vadd.f32 %v3102_v6, %v1678_v10  ;;  %v1690_v15 = vmax.f32 %v1686_v9, %v1688_v63  ;;  %v1852_v6 = vld [vmem:[%s5652_s8 + $0x20] sm:$0xff]  ;;  %v1850_v9 = vld [vmem:[%s5652_s8 + $0x10] sm:$0xff]  ;;  %v2227_v63 = vld [vmem:[%s5652_s8 + $0x198] sm:$0xff] }
 0x3e6   :  { %v2228_v10 = vld [vmem:[%s5652_s8 + $0x1a0] sm:$0xff] }
 0x3e7   :  { %v1689_v13 = vmul.f32 0.01, %v1687_v12 }
 0x3e9   :  { %v1691_v14 = vmax.f32 %v1687_v12, %v1689_v13  ;;  %v1849_v12 = vld [vmem:[%s5652_s8 + $0x8] sm:$0xff]  ;;  %v1848_v13 = vld [vmem:[%s5652_s8] sm:$0xff] }
 0x3eb   :  { %3393 = vmatprep.subr.mxu1 %v1691_v14 }
 0x3ec   :  { %3394 = vmatpush3.msra.mxu1 %v1691_v14 }
 0x3ed   :  { %3395 = vmatprep.subr.mxu1 %v1690_v15 }
 0x3ee   :  { %3396 = vmatpush3.msra.mxu1 %v1690_v15  ;;  %v2226_v15 = vld [vmem:[%s5652_s8 + $0x190] sm:$0xff] }
 0x3ef   :  { %3398 = vmatmul.mubr.msk.f32.vlgmr.msra.gmra.mxu1 %vm1702_vm3, %v1693_v16  ;;  %3412 = vmatprep.subr.mxu1 %v1871_v19  ;;  %v2140_v16 = vld [vmem:[%s5652_s8 + $0x178] sm:$0xff] }
 0x3f0   :  { %3400 = vmatprep.mubr.msk.f32.mxu1 %vm1702_vm3, %v1694_v20  ;;  %3413 = vmatpush3.msra.mxu1 %v1871_v19  ;;  %v2225_v19 = vld [vmem:[%s5652_s8 + $0x188] sm:$0xff]  ;;  %v2139_v20 = vld [vmem:[%s5652_s8 + $0x170] sm:$0xff] }
 0x3f1   :  { %3414 = vmatprep.subr.mxu1 %v1870_v18 }
 0x3f2   :  { %3415 = vmatpush3.msra.mxu1 %v1870_v18 }
 0x3f3   :  { %3401 = vmatmul.mubr.msk.f32.gmra.mxu1 %vm1702_vm3, %v1695_v23  ;;  %3416 = vmatprep.subr.mxu1 %v1869_v25  ;;  %v2138_v23 = vld [vmem:[%s5652_s8 + $0x168] sm:$0xff] }
 0x3f4   :  { %3403 = vmatprep.mubr.msk.f32.mxu1 %vm1702_vm3, %v1696_v27  ;;  %3417 = vmatpush3.msra.mxu1 %v1869_v25  ;;  %v2224_v25 = vld [vmem:[%s5652_s8 + $0x180] sm:$0xff] }
 0x3f5   :  { %3418 = vmatprep.subr.mxu1 %v1868_v28  ;;  %v2137_v27 = vld [vmem:[%s5652_s8 + $0x160] sm:$0xff] }
 0x3f6   :  { %3419 = vmatpush3.msra.mxu1 %v1868_v28 }
 0x3f7   :  { %3404 = vmatmul.mubr.msk.f32.gmra.mxu1 %vm1702_vm3, %v1697_v29  ;;  %3420 = vmatprep.subr.mxu1 %v1867_v26  ;;  %v2136_v29 = vld [vmem:[%s5652_s8 + $0x158] sm:$0xff] }
 0x3f8   :  { %3406 = vmatprep.mubr.msk.f32.mxu1 %vm1702_vm3, %v1698_v17  ;;  %3421 = vmatpush3.msra.mxu1 %v1867_v26  ;;  %v2135_v26 = vld [vmem:[%s5652_s8 + $0x150] sm:$0xff]  ;;  %v2134_v17 = vld [vmem:[%s5652_s8 + $0x148] sm:$0xff] }
 0x3f9   :  { %3422 = vmatprep.subr.mxu1 %v1866_v30 }
 0x3fa   :  { %3423 = vmatpush3.msra.mxu1 %v1866_v30  ;;  %v2133_v30 = vld [vmem:[%s5652_s8 + $0x140] sm:$0xff] }
 0x3fb   :  { %3407 = vmatmul.mubr.msk.f32.gmra.mxu1 %vm1702_vm3, %v1699_v24  ;;  %3424 = vmatprep.subr.mxu1 %v1865_v22  ;;  %v2132_v24 = vld [vmem:[%s5652_s8 + $0x138] sm:$0xff] }
 0x3fc   :  { %3409 = vmatprep.mubr.msk.f32.mxu1 %vm1702_vm3, %v1700_v31  ;;  %3425 = vmatpush3.msra.mxu1 %v1865_v22  ;;  %v2131_v22 = vld [vmem:[%s5652_s8 + $0x130] sm:$0xff]  ;;  %v2130_v31 = vld [vmem:[%s5652_s8 + $0x128] sm:$0xff] }
 0x3fd   :  { %3426 = vmatprep.subr.mxu1 %v1864_v32 }
 0x3fe   :  { %3427 = vmatpush3.msra.mxu1 %v1864_v32  ;;  %v2129_v32 = vld [vmem:[%s5652_s8 + $0x120] sm:$0xff] }
 0x3ff   :  { %3410 = vmatmul.mubr.msk.f32.gmra.mxu1 %vm1702_vm3, %v1701_v33  ;;  %3428 = vmatprep.subr.mxu1 %v1863_v21  ;;  %v2343_v33 = vld [vmem:[%s5654_s10 + $0x58] sm:$0xff] }
 0x400   :  { %3429 = vmatpush3.msra.mxu1 %v1863_v21  ;;  %v2355_v21 = vld [vmem:[%s5654_s10 + $0xb8] sm:$0xff] }
 0x401   :  { %3430 = vmatprep.subr.mxu1 %v1862_v34 }
 0x402   :  { %3431 = vmatpush3.msra.mxu1 %v1862_v34  ;;  %v2342_v34 = vld [vmem:[%s5654_s10 + $0x50] sm:$0xff] }
 0x403   :  { %3432 = vmatprep.subr.mxu1 %v1861_v35 }
 0x404   :  { %3433 = vmatpush3.msra.mxu1 %v1861_v35  ;;  %v2354_v35 = vld [vmem:[%s5654_s10 + $0xb0] sm:$0xff] }
 0x405   :  { %3434 = vmatprep.subr.mxu1 %v1860_v36 }
 0x406   :  { %3435 = vmatpush3.msra.mxu1 %v1860_v36  ;;  %v2341_v36 = vld [vmem:[%s5654_s10 + $0x48] sm:$0xff] }
 0x407   :  { %3439 = vmatprep.subr.mxu1 %v1859_v38 }
 0x4af   :  { %v5078_v53 = vpop.f32.mrf.mxu1 }
 0x4b1   :  { %v1799_v48 = vpop.f32.mrf.mxu1 }
 0x4b3   :  { %v3402_v54 = vpop.f32.mrf.mxu1 }
 0x4b5   :  { %v1809_v55 = vpop.f32.mrf.mxu1 }
 0x4b6   :  { %3436 = vmatprep.mubr.msk.f32.mxu1 %vm344_vm1, %v1809_v55  ;;  %v2332_v55 = vld [vmem:[%s5654_s10] sm:$0xff] }
 0x4b7   :  { %3437 = vmatmul.mubr.msk.f32.vlgmr.msra.gmra.mxu1 %vm344_vm1, %v3402_v54  ;;  %v3405_v56 = vpop.f32.mrf.mxu1  ;;  %v2345_v54 = vld [vmem:[%s5654_s10 + $0x68] sm:$0xff] }
 0x4b8   :  { %3440 = vmatpush3.msra.mxu1 %v1859_v38  ;;  %3463 = vmatprep.mubr.msk.f32.mxu1 %vm344_vm1, %v1799_v48  ;;  %v2340_v38 = vld [vmem:[%s5654_s10 + $0x40] sm:$0xff]  ;;  %v2333_v48 = vld [vmem:[%s5654_s10 + $0x8] sm:$0xff] }
 0x4b9   :  { %3441 = vmatprep.subr.mxu1 %v1858_v46  ;;  %v1819_v58 = vpop.f32.mrf.mxu1 }
 0x4ba   :  { %3442 = vmatpush3.msra.mxu1 %v1858_v46  ;;  %3490 = vmatprep.mubr.msk.f32.mxu0 %vm344_vm1, %v1819_v58  ;;  %v2344_v46 = vld [vmem:[%s5654_s10 + $0x60] sm:$0xff] }
 0x4bb   :  { %3443 = vmatprep.subr.mxu1 %v1857_v57  ;;  %3491 = vmatmul.mubr.msk.f32.vlgmr.msra.gmra.mxu0 %vm344_vm1, %v3405_v56  ;;  %v5133_v11 = vpop.f32.mrf.mxu1 }
 0x4bc   :  { %3444 = vmatpush3.msra.mxu1 %v1857_v57  ;;  %3521 = vmatpush3.msra.mxu0 %v2235_v50  ;;  %v2334_v50 = vld [vmem:[%s5654_s10 + $0x10] sm:$0xff] }
 0x4bd   :  { %3445 = vmatprep.subr.mxu1 %v1856_v59  ;;  %3522 = vmatprep.subr.mxu0 %v2234_v61  ;;  %v1829_v14 = vpop.f32.mrf.mxu1 }
 0x4be   :  { %3446 = vmatpush3.msra.mxu1 %v1856_v59  ;;  %3523 = vmatpush3.msra.mxu0 %v2234_v61 }
 0x4bf   :  { %3447 = vmatprep.subr.mxu1 %v1855_v62  ;;  %3524 = vmatprep.subr.mxu0 %v2233_v0  ;;  %v3411_v18 = vpop.f32.mrf.mxu1 }
 0x4c0   :  { %3448 = vmatpush3.msra.mxu1 %v1855_v62  ;;  %3525 = vmatpush3.msra.mxu0 %v2233_v0 }
 0x4c1   :  { %3449 = vmatprep.subr.mxu1 %v1854_v1  ;;  %3526 = vmatprep.subr.mxu0 %v2232_v2  ;;  %v1839_v28 = vpop.f32.mrf.mxu1 }
 0x4c2   :  { %3450 = vmatpush3.msra.mxu1 %v1854_v1  ;;  %3527 = vmatpush3.msra.mxu0 %v2232_v2 }
 0x4c3   :  { %3451 = vmatprep.subr.mxu1 %v1853_v4  ;;  %3528 = vmatprep.subr.mxu0 %v2231_v5 }
 0x4c4   :  { %3452 = vmatpush3.msra.mxu1 %v1853_v4  ;;  %3529 = vmatpush3.msra.mxu0 %v2231_v5 }
 0x4c5   :  { %3453 = vmatprep.subr.mxu1 %v1852_v6  ;;  %3530 = vmatprep.subr.mxu0 %v2230_v7 }
 0x4c6   :  { %3454 = vmatpush3.msra.mxu1 %v1852_v6  ;;  %3531 = vmatpush3.msra.mxu0 %v2230_v7 }
 0x4c7   :  { %3455 = vmatprep.subr.mxu1 %v1851_v8  ;;  %3532 = vmatprep.subr.mxu0 %v2229_v3 }
 0x4c8   :  { %3456 = vmatpush3.msra.mxu1 %v1851_v8  ;;  %3533 = vmatpush3.msra.mxu0 %v2229_v3  ;;  %v5311_v3 = vld [vmem:[%s5653_s9] ss:$0 sm:$0xff] }
 0x4c9   :  { %3457 = vmatprep.subr.mxu1 %v1850_v9  ;;  %3534 = vmatprep.subr.mxu0 %v2228_v10 }
 0x4ca   :  { %3458 = vmatpush3.msra.mxu1 %v1850_v9  ;;  %3535 = vmatpush3.msra.mxu0 %v2228_v10 }
 0x4cb   :  { %3459 = vmatprep.subr.mxu1 %v1849_v12  ;;  %3536 = vmatprep.subr.mxu0 %v2227_v63 }
 0x4cc   :  { %3460 = vmatpush3.msra.mxu1 %v1849_v12  ;;  %3537 = vmatpush3.msra.mxu0 %v2227_v63  ;;  %v2599_v12 = vld [vmem:[%s5654_s10 + $0x178] sm:$0xff] }
 0x4cd   :  { %3461 = vmatprep.subr.mxu1 %v1848_v13  ;;  %3538 = vmatprep.subr.mxu0 %v2226_v15 }
 0x4ce   :  { %3462 = vmatpush3.msra.mxu1 %v1848_v13  ;;  %3539 = vmatpush3.msra.mxu0 %v2226_v15  ;;  %v2513_v13 = vld [vmem:[%s5654_s10 + $0x118] sm:$0xff]  ;;  %v2512_v15 = vld [vmem:[%s5654_s10 + $0x110] sm:$0xff] }
 0x4cf   :  { %3464 = vmatmul.mubr.msk.f32.vlgmr.msra.gmra.mxu1 %vm344_vm1, %v5078_v53  ;;  %3493 = vmatprep.subr.mxu1 %v2140_v16  ;;  %v2346_v53 = vld [vmem:[%s5654_s10 + $0x70] sm:$0xff] }
 0x4d0   :  { %3494 = vmatpush3.msra.mxu1 %v2140_v16  ;;  %3540 = vmatprep.subr.mxu0 %v2225_v19  ;;  %v2597_v16 = vld [vmem:[%s5654_s10 + $0x168] sm:$0xff] }
 0x4d1   :  { %3495 = vmatprep.subr.mxu1 %v2139_v20  ;;  %3517 = vmatprep.mubr.msk.f32.mxu1 %vm344_vm1, %v1829_v14  ;;  %v2598_v14 = vld [vmem:[%s5654_s10 + $0x170] sm:$0xff] }
 0x4d2   :  { %3496 = vmatpush3.msra.mxu1 %v2139_v20  ;;  %3541 = vmatpush3.msra.mxu0 %v2225_v19  ;;  %v2511_v19 = vld [vmem:[%s5654_s10 + $0x108] sm:$0xff]  ;;  %v2596_v20 = vld [vmem:[%s5654_s10 + $0x160] sm:$0xff] }
 0x4d3   :  { %3497 = vmatprep.subr.mxu1 %v2138_v23  ;;  %3542 = vmatprep.subr.mxu0 %v2224_v25 }
 0x4d4   :  { %3498 = vmatpush3.msra.mxu1 %v2138_v23  ;;  %3543 = vmatpush3.msra.mxu0 %v2224_v25  ;;  %v2595_v23 = vld [vmem:[%s5654_s10 + $0x158] sm:$0xff] }
 0x4d5   :  { %3499 = vmatprep.subr.mxu1 %v2137_v27  ;;  %3544 = vmatprep.mubr.msk.f32.mxu0 %vm344_vm1, %v1839_v28  ;;  %v2509_v25 = vld [vmem:[%s5654_s10 + $0xf8] sm:$0xff]  ;;  %v2508_v28 = vld [vmem:[%s5654_s10 + $0xf0] sm:$0xff] }
 0x4d6   :  { %3500 = vmatpush3.msra.mxu1 %v2137_v27  ;;  %3545 = vmatmul.mubr.msk.f32.vlgmr.msra.gmra.mxu0 %vm344_vm1, %v3411_v18  ;;  %v2510_v18 = vld [vmem:[%s5654_s10 + $0x100] sm:$0xff]  ;;  %v2594_v27 = vld [vmem:[%s5654_s10 + $0x150] sm:$0xff] }
 0x4d7   :  { %3501 = vmatprep.subr.mxu1 %v2136_v29  ;;  %3574 = vmatprep.subr.mxu0 %v3788_v60 }
 0x4d8   :  { %3502 = vmatpush3.msra.mxu1 %v2136_v29  ;;  %3575 = vmatpush3.msra.mxu0 %v2343_v33  ;;  %v2593_v29 = vld [vmem:[%s5654_s10 + $0x148] sm:$0xff] }
 0x4d9   :  { %3503 = vmatprep.subr.mxu1 %v2135_v26  ;;  %3576 = vmatprep.subr.mxu0 %v3788_v60  ;;  %v2589_v33 = vld [vmem:[%s5654_s10 + $0x128] sm:$0xff] }
 0x4da   :  { %3504 = vmatpush3.msra.mxu1 %v2135_v26  ;;  %3577 = vmatpush3.msra.mxu0 %v2342_v34  ;;  %v2507_v26 = vld [vmem:[%s5654_s10 + $0xe8] sm:$0xff]  ;;  %v2588_v34 = vld [vmem:[%s5654_s10 + $0x120] sm:$0xff] }
 0x4db   :  { %3505 = vmatprep.subr.mxu1 %v2134_v17  ;;  %3578 = vmatprep.subr.mxu0 %v3788_v60 }
 0x4dc   :  { %3506 = vmatpush3.msra.mxu1 %v2134_v17  ;;  %3579 = vmatpush3.msra.mxu0 %v2341_v36  ;;  %v2592_v17 = vld [vmem:[%s5654_s10 + $0x140] sm:$0xff] }
 0x4dd   :  { %3507 = vmatprep.subr.mxu1 %v2133_v30  ;;  %3580 = vmatprep.subr.mxu0 %v3788_v60 }
 0x4de   :  { %3508 = vmatpush3.msra.mxu1 %v2133_v30  ;;  %3581 = vmatpush3.msra.mxu0 %v2340_v38  ;;  %v2506_v30 = vld [vmem:[%s5654_s10 + $0xe0] sm:$0xff]  ;;  %v2771_v38 = vld [vmem:[%s5654_s10 + $0x238] sm:$0xff] }
 0x4df   :  { %3509 = vmatprep.subr.mxu1 %v2132_v24  ;;  %3582 = vmatprep.subr.mxu0 %v3788_v60 }
 0x4e0   :  { %3510 = vmatpush3.msra.mxu1 %v2132_v24  ;;  %3583 = vmatpush3.msra.mxu0 %v2339_v40  ;;  %v2591_v24 = vld [vmem:[%s5654_s10 + $0x138] sm:$0xff] }
 0x4e1   :  { %3511 = vmatprep.subr.mxu1 %v2131_v22  ;;  %3584 = vmatprep.subr.mxu0 %v3788_v60  ;;  %v2685_v40 = vld [vmem:[%s5654_s10 + $0x1d8] sm:$0xff] }
 0x4e2   :  { %3512 = vmatpush3.msra.mxu1 %v2131_v22  ;;  %3585 = vmatpush3.msra.mxu0 %v2338_v42  ;;  %v2505_v22 = vld [vmem:[%s5654_s10 + $0xd8] sm:$0xff]  ;;  %v2770_v42 = vld [vmem:[%s5654_s10 + $0x230] sm:$0xff] }
 0x4e3   :  { %3513 = vmatprep.subr.mxu1 %v2130_v31  ;;  %3586 = vmatprep.subr.mxu0 %v3788_v60 }
 0x4e4   :  { %3514 = vmatpush3.msra.mxu1 %v2130_v31  ;;  %3587 = vmatpush3.msra.mxu0 %v2337_v44  ;;  %v2590_v31 = vld [vmem:[%s5654_s10 + $0x130] sm:$0xff] }
 0x4e5   :  { %3515 = vmatprep.subr.mxu1 %v2129_v32  ;;  %3588 = vmatprep.subr.mxu0 %v3788_v60 }
 0x4e6   :  { %3516 = vmatpush3.msra.mxu1 %v2129_v32  ;;  %3589 = vmatpush3.msra.mxu0 %v2336_v47  ;;  %v2504_v32 = vld [vmem:[%s5654_s10 + $0xd0] sm:$0xff]  ;;  %v2683_v47 = vld [vmem:[%s5654_s10 + $0x1c8] sm:$0xff] }
 0x4e7   :  { %3518 = vmatmul.mubr.msk.f32.vlgmr.msra.gmra.mxu1 %vm344_vm1, %v5133_v11  ;;  %3547 = vmatprep.subr.mxu1 %v3788_v60 }
 0x4e8   :  { %3548 = vmatpush3.msra.mxu1 %v2355_v21  ;;  %3590 = vmatprep.subr.mxu0 %v3788_v60  ;;  %v2503_v21 = vld [vmem:[%s5654_s10 + $0xc8] sm:$0xff] }
 0x4e9   :  { %3549 = vmatprep.subr.mxu1 %v3788_v60  ;;  %3591 = vmatpush3.msra.mxu0 %v2335_v51  ;;  %v2682_v51 = vld [vmem:[%s5654_s10 + $0x1c0] sm:$0xff] }
 0x4ea   :  { %3550 = vmatpush3.msra.mxu1 %v2354_v35  ;;  %3592 = vmatprep.subr.mxu0 %v3788_v60 }
 0x4eb   :  { %3551 = vmatprep.subr.mxu1 %v3788_v60  ;;  %3593 = vmatpush3.msra.mxu0 %v2334_v50  ;;  %v2767_v50 = vld [vmem:[%s5654_s10 + $0x218] sm:$0xff] }
 0x4ec   :  { %3552 = vmatpush3.msra.mxu1 %v2353_v37  ;;  %3594 = vmatprep.subr.mxu0 %v3788_v60  ;;  %v2502_v37 = vld [vmem:[%s5654_s10 + $0xc0] sm:$0xff] }
 0x4ed   :  { %3553 = vmatprep.subr.mxu1 %v3788_v60  ;;  %3595 = vmatpush3.msra.mxu0 %v2333_v48  ;;  %v2766_v48 = vld [vmem:[%s5654_s10 + $0x210] sm:$0xff] }
 0x4ee   :  { %3554 = vmatpush3.msra.mxu1 %v2352_v39  ;;  %3596 = vmatprep.subr.mxu0 %v3788_v60 }
 0x4ef   :  { %3555 = vmatprep.subr.mxu1 %v3788_v60  ;;  %3597 = vmatpush3.msra.mxu0 %v2332_v55 }
 0x4f0   :  { %3556 = vmatpush3.msra.mxu1 %v2351_v41  ;;  %3598 = vmatprep.mubr.msk.f32.mxu0 %vm3789_vm4, %v3788_v60 }
 0x4f1   :  { %3557 = vmatprep.subr.mxu1 %v3788_v60  ;;  %3628 = vmatprep.subr.mxu0 %v3788_v60 }
 0x4f2   :  { %3558 = vmatpush3.msra.mxu1 %v2350_v43  ;;  %3571 = vmatprep.mubr.msk.f32.mxu1 %vm3789_vm4, %v3788_v60  ;;  %v2684_v43 = vld [vmem:[%s5654_s10 + $0x1d0] sm:$0xff] }
 0x4f3   :  { %3559 = vmatprep.subr.mxu1 %v3788_v60 }
 0x4f4   :  { %3560 = vmatpush3.msra.mxu1 %v2349_v45  ;;  %v2769_v45 = vld [vmem:[%s5654_s10 + $0x228] sm:$0xff] }
 0x4f5   :  { %3561 = vmatprep.subr.mxu1 %v3788_v60 }
 0x4f6   :  { %3562 = vmatpush3.msra.mxu1 %v2348_v49  ;;  %v2768_v49 = vld [vmem:[%s5654_s10 + $0x220] sm:$0xff] }
 0x4f7   :  { %3563 = vmatprep.subr.mxu1 %v3788_v60 }
 0x4f8   :  { %3564 = vmatpush3.msra.mxu1 %v2347_v52 }
 0x4f9   :  { %3565 = vmatprep.subr.mxu1 %v3788_v60 }
 0x4fa   :  { %3566 = vmatpush3.msra.mxu1 %v2346_v53  ;;  %v2681_v53 = vld [vmem:[%s5654_s10 + $0x1b8] sm:$0xff] }
 0x4fb   :  { %3567 = vmatprep.subr.mxu1 %v3788_v60 }
 0x4fc   :  { %3568 = vmatpush3.msra.mxu1 %v2345_v54  ;;  %v2680_v54 = vld [vmem:[%s5654_s10 + $0x1b0] sm:$0xff] }
 0x4fd   :  { %3569 = vmatprep.subr.mxu1 %v3788_v60 }
 0x4fe   :  { %3570 = vmatpush3.msra.mxu1 %v2344_v46  ;;  %v2765_v46 = vld [vmem:[%s5654_s10 + $0x208] sm:$0xff] }
 0x4ff   :  { %3601 = vmatprep.subr.mxu1 %v3788_v60 }
 0x577   :  { %v5298_v56 = vpop.f32.mrf.mxu1 }
 0x579   :  { %v1944_v57 = vpop.f32.mrf.mxu1 }
 0x57b   :  { %v5302_v61 = vpop.f32.mrf.mxu0 }
 0x57d   :  { %v2118_v0 = vpop.f32.mrf.mxu0 }
 0x58f   :  { %v5300_v58 = vpop.f32.mrf.mxu1 }
 0x590   :  { %v2031_v35 = vadd.f32 %v5300_v58, %v5298_v56  ;;  %v2679_v56 = vld [vmem:[%s5654_s10 + $0x1a8] sm:$0xff]  ;;  %v2678_v58 = vld [vmem:[%s5654_s10 + $0x1a0] sm:$0xff] }
 0x591   :  { %v2025_v59 = vpop.f32.mrf.mxu1 }
 0x592   :  { %v2026_v62 = vadd.f32 %v2025_v59, %v1944_v57  ;;  %v2128_v41 = vadd.f32 %v5302_v61, %v2031_v35  ;;  %v2764_v57 = vld [vmem:[%s5654_s10 + $0x200] sm:$0xff]  ;;  %v2763_v61 = vld [vmem:[%s5654_s10 + $0x1f8] sm:$0xff] }
 0x594   :  { %v2127_v4 = vadd.f32 %v2118_v0, %v2026_v62  ;;  %v2677_v62 = vld [vmem:[%s5654_s10 + $0x198] sm:$0xff]  ;;  %v2762_v0 = vld [vmem:[%s5654_s10 + $0x1f0] sm:$0xff] }
 0x596   :  { %v5306_v2 = vpop.f32.mrf.mxu0 }
 0x598   :  { %v2308_v7 = vpop.f32.mrf.mxu0 }
 0x5a7   :  { %v5304_v1 = vpop.f32.mrf.mxu1 }
 0x5a8   :  { %v2223_v44 = vadd.f32 %v5304_v1, %v2128_v41  ;;  %v2676_v1 = vld [vmem:[%s5654_s10 + $0x190] sm:$0xff] }
 0x5a9   :  { %v2213_v5 = vpop.f32.mrf.mxu1 }
 0x5aa   :  { %v2222_v6 = vadd.f32 %v2213_v5, %v2127_v4  ;;  %v2318_v52 = vadd.f32 %v5306_v2, %v2223_v44  ;;  %v2761_v4 = vld [vmem:[%s5654_s10 + $0x1e8] sm:$0xff] }
 0x5ab   :  { %v2675_v5 = vld [vmem:[%s5654_s10 + $0x188] sm:$0xff] }
 0x5ac   :  { %v2317_v8 = vadd.f32 %v2308_v7, %v2222_v6  ;;  %v2327_v55 = vadd.f32 %v5311_v3, %v2318_v52  ;;  %v2760_v6 = vld [vmem:[%s5654_s10 + $0x1e0] sm:$0xff] }
 0x5ae   :  { %v2326_v9 = vadd.f32 %v5311_v3, %v2317_v8  ;;  %v2329_v59 = vmul.f32 0.01, %v2327_v55  ;;  %v2674_v8 = vld [vmem:[%s5654_s10 + $0x180] sm:$0xff]  ;;  %v2943_v3 = vld [vmem:[%s5654_s10 + $0x2f8] sm:$0xff] }
 0x5b0   :  { %v2328_v10 = vmul.f32 0.01, %v2326_v9  ;;  %v5506_v2 = vmax.f32 %v2327_v55, %v2329_v59  ;;  %v3132_v55 = vld [vmem:[%s5655_s11] ss:$0 sm:$0xff] }
 0x5b2   :  { %v5314_v11 = vmax.f32 %v2326_v9, %v2328_v10  ;;  %v2772_v7 = vrot.slane %v5506_v2, 2  ;;  %v2857_v9 = vld [vmem:[%s5654_s10 + $0x298] sm:$0xff]  ;;  %v2942_v10 = vld [vmem:[%s5654_s10 + $0x2f0] sm:$0xff] }
 0x5b4   :  { %3599 = vmatmul.mubr.msk.f32.vlgmr.msra.gmra.mxu0 %vm344_vm1, %v5314_v11  ;;  %v2357_v63 = vrot.slane %v5314_v11, 2  ;;  %v2600_v36 = vrot.slane %v5314_v11, 6  ;;  %v2514_v39 = vrot.slane %v5314_v11, 4  ;;  %v2856_v11 = vld [vmem:[%s5654_s10 + $0x290] sm:$0xff] }
 0x5b5   :  { %3629 = vmatpush3.msra.mxu0 %v2599_v12  ;;  %3652 = vmatprep.mubr.msk.f32.mxu0 %vm3789_vm4, %v3788_v60  ;;  %v2941_v12 = vld [vmem:[%s5654_s10 + $0x2e8] sm:$0xff] }
 0x5b6   :  { %3630 = vmatprep.subr.mxu0 %v3788_v60  ;;  %3572 = vmatmul.mubr.msk.f32.vlgmr.msra.gmra.mxu1 %vm344_vm1, %v2357_v63  ;;  %v2855_v63 = vld [vmem:[%s5654_s10 + $0x288] sm:$0xff] }
 0x5b7   :  { %3602 = vmatpush3.msra.mxu1 %v2513_v13  ;;  %3631 = vmatpush3.msra.mxu0 %v2598_v14  ;;  %v2940_v13 = vld [vmem:[%s5654_s10 + $0x2e0] sm:$0xff] }
 0x5b8   :  { %3603 = vmatprep.subr.mxu1 %v3788_v60  ;;  %3632 = vmatprep.subr.mxu0 %v3788_v60  ;;  %v2854_v14 = vld [vmem:[%s5654_s10 + $0x280] sm:$0xff] }
 0x5b9   :  { %3604 = vmatpush3.msra.mxu1 %v2512_v15  ;;  %3633 = vmatpush3.msra.mxu0 %v2597_v16  ;;  %v2939_v15 = vld [vmem:[%s5654_s10 + $0x2d8] sm:$0xff] }
 0x5ba   :  { %3605 = vmatprep.subr.mxu1 %v3788_v60  ;;  %3634 = vmatprep.subr.mxu0 %v3788_v60  ;;  %v2853_v16 = vld [vmem:[%s5654_s10 + $0x278] sm:$0xff] }
 0x5bb   :  { %3606 = vmatpush3.msra.mxu1 %v2511_v19  ;;  %3635 = vmatpush3.msra.mxu0 %v2596_v20  ;;  %v2938_v19 = vld [vmem:[%s5654_s10 + $0x2d0] sm:$0xff] }
 0x5bc   :  { %3607 = vmatprep.subr.mxu1 %v3788_v60  ;;  %3636 = vmatprep.subr.mxu0 %v3788_v60  ;;  %v2852_v20 = vld [vmem:[%s5654_s10 + $0x270] sm:$0xff] }
 0x5bd   :  { %3608 = vmatpush3.msra.mxu1 %v2510_v18  ;;  %3637 = vmatpush3.msra.mxu0 %v2595_v23  ;;  %v2937_v18 = vld [vmem:[%s5654_s10 + $0x2c8] sm:$0xff] }
 0x5be   :  { %3609 = vmatprep.subr.mxu1 %v3788_v60  ;;  %3638 = vmatprep.subr.mxu0 %v3788_v60  ;;  %v2851_v23 = vld [vmem:[%s5654_s10 + $0x268] sm:$0xff] }
 0x5bf   :  { %3610 = vmatpush3.msra.mxu1 %v2509_v25  ;;  %3639 = vmatpush3.msra.mxu0 %v2594_v27  ;;  %v2936_v25 = vld [vmem:[%s5654_s10 + $0x2c0] sm:$0xff] }
 0x5c0   :  { %3611 = vmatprep.subr.mxu1 %v3788_v60  ;;  %3640 = vmatprep.subr.mxu0 %v3788_v60  ;;  %v2850_v27 = vld [vmem:[%s5654_s10 + $0x260] sm:$0xff] }
 0x5c1   :  { %3612 = vmatpush3.msra.mxu1 %v2508_v28  ;;  %3641 = vmatpush3.msra.mxu0 %v2593_v29  ;;  %v2935_v28 = vld [vmem:[%s5654_s10 + $0x2b8] sm:$0xff] }
 0x5c2   :  { %3613 = vmatprep.subr.mxu1 %v3788_v60  ;;  %3642 = vmatprep.subr.mxu0 %v3788_v60  ;;  %v2849_v29 = vld [vmem:[%s5654_s10 + $0x258] sm:$0xff] }
 0x5c3   :  { %3614 = vmatpush3.msra.mxu1 %v2507_v26  ;;  %3643 = vmatpush3.msra.mxu0 %v2592_v17  ;;  %v2934_v26 = vld [vmem:[%s5654_s10 + $0x2b0] sm:$0xff] }
 0x5c4   :  { %3615 = vmatprep.subr.mxu1 %v3788_v60  ;;  %3644 = vmatprep.subr.mxu0 %v3788_v60  ;;  %v2848_v17 = vld [vmem:[%s5654_s10 + $0x250] sm:$0xff] }
 0x5c5   :  { %3616 = vmatpush3.msra.mxu1 %v2506_v30  ;;  %3645 = vmatpush3.msra.mxu0 %v2591_v24  ;;  %v2933_v30 = vld [vmem:[%s5654_s10 + $0x2a8] sm:$0xff] }
 0x5c6   :  { %3617 = vmatprep.subr.mxu1 %v3788_v60  ;;  %3646 = vmatprep.subr.mxu0 %v3788_v60  ;;  %v2847_v24 = vld [vmem:[%s5654_s10 + $0x248] sm:$0xff] }
 0x5c7   :  { %3618 = vmatpush3.msra.mxu1 %v2505_v22  ;;  %3647 = vmatpush3.msra.mxu0 %v2590_v31  ;;  %v2932_v22 = vld [vmem:[%s5654_s10 + $0x2a0] sm:$0xff]  ;;  %v2944_v31 = vrot.slane %v5506_v2, 6 }
 0x5c8   :  { %3619 = vmatprep.subr.mxu1 %v3788_v60  ;;  %3648 = vmatprep.subr.mxu0 %v3788_v60 }
 0x5c9   :  { %3620 = vmatpush3.msra.mxu1 %v2504_v32  ;;  %3649 = vmatpush3.msra.mxu0 %v2589_v33  ;;  %v2846_v32 = vld [vmem:[%s5654_s10 + $0x240] sm:$0xff]  ;;  %v2858_v33 = vrot.slane %v5506_v2, 4 }
 0x5ca   :  { %3621 = vmatprep.subr.mxu1 %v3788_v60  ;;  %3650 = vmatprep.subr.mxu0 %v3788_v60 }
 0x5cb   :  { %3622 = vmatpush3.msra.mxu1 %v2503_v21  ;;  %3651 = vmatpush3.msra.mxu0 %v2588_v34 }
 0x5cc   :  { %3623 = vmatprep.subr.mxu1 %v3788_v60  ;;  %3653 = vmatmul.mubr.msk.f32.vlgmr.msra.gmra.mxu0 %vm344_vm1, %v2600_v36 }
 0x5cd   :  { %3682 = vmatprep.subr.mxu0 %v3788_v60  ;;  %3624 = vmatpush3.msra.mxu1 %v2502_v37 }
 0x5ce   :  { %3625 = vmatprep.mubr.msk.f32.mxu1 %vm3789_vm4, %v3788_v60  ;;  %3683 = vmatpush3.msra.mxu0 %v2771_v38 }
 0x5cf   :  { %3626 = vmatmul.mubr.msk.f32.vlgmr.msra.gmra.mxu1 %vm344_vm1, %v2514_v39  ;;  %3655 = vmatprep.subr.mxu1 %v3788_v60 }
 0x5d0   :  { %3684 = vmatprep.subr.mxu0 %v3788_v60  ;;  %3656 = vmatpush3.msra.mxu1 %v2685_v40 }
 0x5d1   :  { %3685 = vmatpush3.msra.mxu0 %v2770_v42  ;;  %3657 = vmatprep.subr.mxu1 %v3788_v60 }
 0x5d2   :  { %3686 = vmatprep.subr.mxu0 %v3788_v60  ;;  %3658 = vmatpush3.msra.mxu1 %v2684_v43 }
 0x5d3   :  { %3687 = vmatpush3.msra.mxu0 %v2769_v45  ;;  %3659 = vmatprep.subr.mxu1 %v3788_v60 }
 0x5d4   :  { %3688 = vmatprep.subr.mxu0 %v3788_v60  ;;  %3660 = vmatpush3.msra.mxu1 %v2683_v47 }
 0x5d5   :  { %3689 = vmatpush3.msra.mxu0 %v2768_v49  ;;  %3661 = vmatprep.subr.mxu1 %v3788_v60 }
 0x5d6   :  { %3690 = vmatprep.subr.mxu0 %v3788_v60  ;;  %3662 = vmatpush3.msra.mxu1 %v2682_v51 }
 0x5d7   :  { %3691 = vmatpush3.msra.mxu0 %v2767_v50  ;;  %3663 = vmatprep.subr.mxu1 %v3788_v60 }
 0x5d8   :  { %3692 = vmatprep.subr.mxu0 %v3788_v60  ;;  %3664 = vmatpush3.msra.mxu1 %v2681_v53 }
 0x5d9   :  { %3693 = vmatpush3.msra.mxu0 %v2766_v48  ;;  %3665 = vmatprep.subr.mxu1 %v3788_v60 }
 0x5da   :  { %3694 = vmatprep.subr.mxu0 %v3788_v60  ;;  %3666 = vmatpush3.msra.mxu1 %v2680_v54 }
 0x5db   :  { %3695 = vmatpush3.msra.mxu0 %v2765_v46  ;;  %3667 = vmatprep.subr.mxu1 %v3788_v60 }
 0x5dc   :  { %3696 = vmatprep.subr.mxu0 %v3788_v60  ;;  %3668 = vmatpush3.msra.mxu1 %v2679_v56 }
 0x5dd   :  { %3697 = vmatpush3.msra.mxu0 %v2764_v57  ;;  %3669 = vmatprep.subr.mxu1 %v3788_v60 }
 0x5de   :  { %3698 = vmatprep.subr.mxu0 %v3788_v60  ;;  %3670 = vmatpush3.msra.mxu1 %v2678_v58 }
 0x5df   :  { %3699 = vmatpush3.msra.mxu0 %v2763_v61  ;;  %3671 = vmatprep.subr.mxu1 %v3788_v60 }
 0x5e0   :  { %3700 = vmatprep.subr.mxu0 %v3788_v60  ;;  %3672 = vmatpush3.msra.mxu1 %v2677_v62 }
 0x5e1   :  { %3701 = vmatpush3.msra.mxu0 %v2762_v0  ;;  %3673 = vmatprep.subr.mxu1 %v3788_v60 }
 0x5e2   :  { %3702 = vmatprep.subr.mxu0 %v3788_v60  ;;  %3674 = vmatpush3.msra.mxu1 %v2676_v1 }
 0x5e3   :  { %3703 = vmatpush3.msra.mxu0 %v2761_v4  ;;  %3675 = vmatprep.subr.mxu1 %v3788_v60 }
 0x5e4   :  { %3704 = vmatprep.subr.mxu0 %v3788_v60  ;;  %3676 = vmatpush3.msra.mxu1 %v2675_v5 }
 0x5e5   :  { %3705 = vmatpush3.msra.mxu0 %v2760_v6  ;;  %3706 = vmatprep.mubr.msk.f32.mxu0 %vm3789_vm4, %v3788_v60 }
 0x5e6   :  { %3677 = vmatprep.subr.mxu1 %v3788_v60  ;;  %3707 = vmatmul.mubr.msk.f32.vlgmr.msra.gmra.mxu0 %vm344_vm1, %v2772_v7 }
 0x5e7   :  { %3736 = vmatprep.subr.mxu0 %v3788_v60  ;;  %3678 = vmatpush3.msra.mxu1 %v2674_v8 }
 0x5e8   :  { %3679 = vmatprep.mubr.msk.f32.mxu1 %vm3789_vm4, %v3788_v60  ;;  %3737 = vmatpush3.msra.mxu0 %v2943_v3 }
 0x5e9   :  { %3680 = vmatmul.mubr.msk.f32.vlgmr.msra.gmra.mxu1 %vm344_vm1, %v5506_v2  ;;  %3709 = vmatprep.subr.mxu1 %v3788_v60 }
 0x5ea   :  { %3738 = vmatprep.subr.mxu0 %v3788_v60  ;;  %3710 = vmatpush3.msra.mxu1 %v2857_v9 }
 0x5eb   :  { %3739 = vmatpush3.msra.mxu0 %v2942_v10  ;;  %3711 = vmatprep.subr.mxu1 %v3788_v60 }
 0x5ec   :  { %3740 = vmatprep.subr.mxu0 %v3788_v60  ;;  %3712 = vmatpush3.msra.mxu1 %v2856_v11 }
 0x5ed   :  { %3741 = vmatpush3.msra.mxu0 %v2941_v12  ;;  %3713 = vmatprep.subr.mxu1 %v3788_v60 }
 0x5ee   :  { %3742 = vmatprep.subr.mxu0 %v3788_v60  ;;  %3714 = vmatpush3.msra.mxu1 %v2855_v63 }
 0x5ef   :  { %3743 = vmatpush3.msra.mxu0 %v2940_v13  ;;  %3715 = vmatprep.subr.mxu1 %v3788_v60 }
 0x5f0   :  { %3744 = vmatprep.subr.mxu0 %v3788_v60  ;;  %3716 = vmatpush3.msra.mxu1 %v2854_v14 }
 0x5f1   :  { %3745 = vmatpush3.msra.mxu0 %v2939_v15  ;;  %3717 = vmatprep.subr.mxu1 %v3788_v60 }
 0x5f2   :  { %3746 = vmatprep.subr.mxu0 %v3788_v60  ;;  %3718 = vmatpush3.msra.mxu1 %v2853_v16 }
 0x5f3   :  { %3747 = vmatpush3.msra.mxu0 %v2938_v19  ;;  %3719 = vmatprep.subr.mxu1 %v3788_v60 }
 0x5f4   :  { %3748 = vmatprep.subr.mxu0 %v3788_v60  ;;  %3720 = vmatpush3.msra.mxu1 %v2852_v20 }
 0x5f5   :  { %3749 = vmatpush3.msra.mxu0 %v2937_v18  ;;  %3721 = vmatprep.subr.mxu1 %v3788_v60 }
 0x5f6   :  { %3750 = vmatprep.subr.mxu0 %v3788_v60  ;;  %3722 = vmatpush3.msra.mxu1 %v2851_v23 }
 0x5f7   :  { %3751 = vmatpush3.msra.mxu0 %v2936_v25  ;;  %3723 = vmatprep.subr.mxu1 %v3788_v60 }
 0x5f8   :  { %3752 = vmatprep.subr.mxu0 %v3788_v60  ;;  %3724 = vmatpush3.msra.mxu1 %v2850_v27 }
 0x5f9   :  { %3753 = vmatpush3.msra.mxu0 %v2935_v28  ;;  %3725 = vmatprep.subr.mxu1 %v3788_v60 }
 0x5fa   :  { %3754 = vmatprep.subr.mxu0 %v3788_v60  ;;  %3726 = vmatpush3.msra.mxu1 %v2849_v29 }
 0x5fb   :  { %3755 = vmatpush3.msra.mxu0 %v2934_v26  ;;  %3727 = vmatprep.subr.mxu1 %v3788_v60 }
 0x5fc   :  { %3756 = vmatprep.subr.mxu0 %v3788_v60  ;;  %3728 = vmatpush3.msra.mxu1 %v2848_v17 }
 0x5fd   :  { %3757 = vmatpush3.msra.mxu0 %v2933_v30  ;;  %3729 = vmatprep.subr.mxu1 %v3788_v60 }
 0x5fe   :  { %3758 = vmatprep.subr.mxu0 %v3788_v60  ;;  %3730 = vmatpush3.msra.mxu1 %v2847_v24 }
 0x5ff   :  { %3759 = vmatpush3.msra.mxu0 %v2932_v22  ;;  %3760 = vmatprep.mubr.msk.f32.mxu0 %vm3789_vm4, %v3788_v60 }
 0x600   :  { %3731 = vmatprep.subr.mxu1 %v3788_v60  ;;  %3761 = vmatmul.mubr.msk.f32.vlgmr.msra.gmra.mxu0 %vm344_vm1, %v2944_v31 }
 0x601   :  { %3732 = vmatpush3.msra.mxu1 %v2846_v32  ;;  %3733 = vmatprep.mubr.msk.f32.mxu1 %vm3789_vm4, %v3788_v60 }
 0x602   :  { %3734 = vmatmul.mubr.msk.f32.vlgmr.msra.gmra.mxu1 %vm344_vm1, %v2858_v33 }
 0x674   :  { %v2498_v21 = vpop.f32.mrf.mxu0 }
 0x676   :  { %v2426_v34 = vpop.f32.mrf.mxu1  ;;  %v3600_v35 = vpop.f32.mrf.mxu0 }
 0x677   :  { %v2499_v36 = vadd.f32 %v2498_v21, %v2426_v34 }
 0x678   :  { %v3573_v37 = vpop.f32.mrf.mxu1 }
 0x68c   :  { %v2669_v38 = vpop.f32.mrf.mxu0 }
 0x68e   :  { %v3654_v39 = vpop.f32.mrf.mxu0 }
 0x68f   :  { %v2583_v40 = vpop.f32.mrf.mxu1 }
 0x690   :  { %v2587_v47 = vadd.f32 %v2583_v40, %v2499_v36 }
 0x691   :  { %v3627_v41 = vpop.f32.mrf.mxu1 }
 0x692   :  { %v2673_v49 = vadd.f32 %v2669_v38, %v2587_v47 }
 0x6a6   :  { %v2841_v42 = vpop.f32.mrf.mxu0 }
 0x6a8   :  { %v3708_v43 = vpop.f32.mrf.mxu0 }
 0x6a9   :  { %v2755_v44 = vpop.f32.mrf.mxu1 }
 0x6aa   :  { %v2759_v51 = vadd.f32 %v2755_v44, %v2673_v49 }
 0x6ab   :  { %v3681_v45 = vpop.f32.mrf.mxu1 }
 0x6ac   :  { %v2845_v60 = vadd.f32 %v2841_v42, %v2759_v51 }
 0x6c0   :  { %v3013_v52 = vpop.f32.mrf.mxu0 }
 0x6c2   :  { %v2927_v50 = vpop.f32.mrf.mxu1  ;;  %v3762_v53 = vpop.f32.mrf.mxu0 }
 0x6c3   :  { %v2931_v48 = vadd.f32 %v2927_v50, %v2845_v60 }
 0x6c4   :  { %v3735_v54 = vpop.f32.mrf.mxu1 }
 0x6c5   :  { %v3017_v46 = vadd.f32 %v3013_v52, %v2931_v48 }
 0x6c7   :  { %v3025_v56 = vadd.f32 %v3132_v55, %v3017_v46 }
 0x6c9   :  { %3027 = vst.msk [vmem:[#allocation2] sm:$0x3] %vm3026_vm5, %v3025_v56 }
 0x6ca   :  { %3777 = shalt.err (!%p3774_p4)
}
 0x6cb   :  { %3037 = dma.vmem_to_hbm [thread:$0]  %s3035_s24, 32, %s5656_s12, [#allocation3]  }
 0x6cc   :  { %3786 = dma.done.wait [#allocation3], 32  }
 0x6cd   :  { %3787 = vsyncadd [#allocation3], 4294967264 }
 0x6ce   :  { %3041 = vsyncpa [#allocation3], 1 }

</bundles_post_ra>
